<compile_context>
chip_gen: v5e
topology: v5e:2x2
jax: 0.10.0
libtpu: 0.0.40
codegen_flags: <defaults>
</compile_context>

<pallas_src>
import jax
import jax.numpy as jnp
import numpy as np
from jax.experimental import pallas as pl
from jax.experimental.pallas import tpu as pltpu

EPS = 1e-5


def _make_kernel(C, H, W, B):
    HW = H * W

    def kernel(x_ref, w1_ref, w2_ref, vec_ref, o_ref):
        # x_ref / o_ref : (B, C, HW) f32 (HW lane-dense)
        # w*_ref        : (C, 9*C) im2col-packed weights (tap-major: t*C + cin)
        # vec_ref       : (C, 8) columns = [b1, g1, bt1, b2, g2, bt2, 0, 0]

        # ---- reflection-boundary masks built in-kernel (no HBM edge tensor)
        lane = jax.lax.broadcasted_iota(jnp.int32, (C, HW), 1)
        if (W & (W - 1)) == 0:                    # power-of-two fast path
            col = jnp.bitwise_and(lane, W - 1)
        else:
            col = lane % W
        top = lane < W                            # spatial row y == 0
        bot = lane >= HW - W                      # y == H-1
        left = col == 0                           # x == 0
        right = col == W - 1                      # x == W-1

        # ---- loop-invariant parameter loads (single-buffered operands)
        w1 = w1_ref[...]
        w2 = w2_ref[...]
        vec = vec_ref[...]
        b1, g1, bt1 = vec[:, 0:1], vec[:, 1:2], vec[:, 2:3]
        b2, g2, bt2 = vec[:, 3:4], vec[:, 4:5], vec[:, 5:6]

        def conv3x3(v, w, bias):
            # Row-shifted views. pltpu.roll is circular; the wrapped rows are
            # exactly the ones overwritten by the reflected rows below.
            up = pltpu.roll(v, HW - W, 1)         # v[y+1, :]
            down = pltpu.roll(v, W, 1)            # v[y-1, :]
            r_m1 = jnp.where(top, up, down)       # v[reflect(y-1), :]
            r_p1 = jnp.where(bot, down, up)       # v[reflect(y+1), :]
            taps = []
            for r in (r_m1, v, r_p1):             # ky = 0, 1, 2
                cl = pltpu.roll(r, 1, 1)          # r[:, x-1]
                cr = pltpu.roll(r, HW - 1, 1)     # r[:, x+1]
                taps.append(jnp.where(left, cr, cl))    # kx=0: reflect(x-1)
                taps.append(r)                          # kx=1
                taps.append(jnp.where(right, cl, cr))   # kx=2: reflect(x+1)
            # Single im2col matmul: (C, 9C) @ (9C, HW). At C=8 (K=72) this is
            # one f32 MXU pass; for large C switch to accumulating nine
            # (C, C) @ (C, HW) matmuls with bf16 operands to avoid the 9x
            # patch buffer and multi-pass f32 MXU work.
            pat = jnp.concatenate(taps, axis=0)         # (9C, HW)
            y = jnp.dot(w, pat, preferred_element_type=jnp.float32)
            return y + bias                             # bias (C, 1)

        def instance_norm(y, gamma, beta):
            # One-pass biased variance over the spatial (lane) axis, all f32.
            inv_hw = 1.0 / HW
            mean = jnp.sum(y, axis=1, keepdims=True) * inv_hw
            var = jnp.sum(y * y, axis=1, keepdims=True) * inv_hw - mean * mean
            scale = gamma * jax.lax.rsqrt(jnp.maximum(var, 0.0) + EPS)
            shift = beta - mean * scale
            return y * scale + shift                    # fused scale + shift

        # ---- B images per grid step; loop unrolled at trace time ----------
        # IN statistics are computed per image, so batching never mixes stats.
        for img in range(B):
            x = x_ref[img]                              # (C, HW)
            y = conv3x3(x, w1, b1)                      # ConvBlock 1
            y = jnp.maximum(instance_norm(y, g1, bt1), 0.0)
            y = conv3x3(y, w2, b2)                      # ConvBlock 2 (no act)
            y = instance_norm(y, g2, bt2)
            o_ref[img] = (x + y).astype(o_ref.dtype)    # residual add

    return kernel


def prepare_params(params):
    """One-time packing of weights / per-channel vectors (hoisted out of the
    per-forward path)."""
    C = params["w1"].shape[0]

    def pack_w(w):  # (C_out, C_in, 3, 3) -> (C_out, 9*C_in), tap-major t*C+cin
        return jnp.transpose(w, (0, 2, 3, 1)).reshape(C, 9 * C)

    z = jnp.zeros((C,), jnp.float32)
    vec = jnp.stack([params["b1"], params["g1"], params["bt1"],
                     params["b2"], params["g2"], params["bt2"], z, z], axis=1)
    return {"w1": pack_w(params["w1"]), "w2": pack_w(params["w2"]),
            "vec": vec.astype(jnp.float32)}


def _images_per_step(N, C, HW):
    # Batch images per grid step to amortize fixed per-step overhead, but keep
    # >= 2 grid steps when possible (v7x has 2 TensorCores) and cap the block
    # at ~4 MiB of activations so it stays comfortably inside VMEM.
    max_b = max(1, (4 << 20) // (C * HW * 4))
    b = min(max(N // 2, 1), max_b)
    while N % b:
        b -= 1
    return b


def residual_block(x_nchw, packed):
    """x_nchw: (N, C, H, W) float32; packed: output of prepare_params()."""
    N, C, H, W = x_nchw.shape
    assert H >= 2 and W >= 2, "ReflectionPad2d(1) needs H, W >= 2"
    HW = H * W
    x = x_nchw.reshape(N, C, HW)          # free reshape, stays channel-major

    B = _images_per_step(N, C, HW)        # images per grid step
    G = N // B                            # grid steps

    img_spec = pl.BlockSpec((B, C, HW), lambda n: (n, 0, 0))

    def build(single_buffer_consts):
        # Constant-index operands never change across the grid, so the second
        # pipeline buffer is wasted VMEM; request single buffering for them.
        extra = {"pipeline_mode": pl.Buffered(1)} if single_buffer_consts else {}
        w_spec = pl.BlockSpec((C, 9 * C), lambda n: (0, 0), **extra)
        v_spec = pl.BlockSpec((C, 8), lambda n: (0, 0), **extra)
        return pl.pallas_call(
            _make_kernel(C, H, W, B),
            out_shape=jax.ShapeDtypeStruct((N, C, HW), x.dtype),
            grid=(G,),
            in_specs=[img_spec, w_spec, w_spec, v_spec],
            out_specs=img_spec,
            # Write the result into x's buffer (saving applies when the caller
            # donates x under jit; otherwise XLA inserts a defensive copy).
            input_output_aliases={0: 0},
            compiler_params=pltpu.CompilerParams(
                dimension_semantics=("parallel",)),
        )

    args = (x, packed["w1"], packed["w2"], packed["vec"])
    try:
        out = build(True)(*args)
    except Exception:  # pipeline_mode=Buffered(1) unsupported on this build
        out = build(False)(*args)

    return out.reshape(N, C, H, W)


def reference_forward(x, p):
    """Pure-JAX reference mirroring the PyTorch module (NCHW)."""
    # TODO(synk): InstanceNorm2d(track_running_stats=True) running-buffer
    # updates are a training-time side effect; forward here uses per-instance
    # stats (train-mode semantics), matching the kernel.
    def conv_block(v, w, b, g, bt, relu):
        vp = jnp.pad(v, ((0, 0), (0, 0), (1, 1), (1, 1)), mode="reflect")
        y = jax.lax.conv_general_dilated(
            vp, w, (1, 1), "VALID",
            dimension_numbers=("NCHW", "OIHW", "NCHW"))
        y = y + b[None, :, None, None]
        mean = jnp.mean(y, axis=(2, 3), keepdims=True)
        var = jnp.mean((y - mean) ** 2, axis=(2, 3), keepdims=True)
        y = (y - mean) * jax.lax.rsqrt(var + EPS)
        y = y * g[None, :, None, None] + bt[None, :, None, None]
        if relu:
            y = jnp.maximum(y, 0.0)
        return y

    y = conv_block(x, p["w1"], p["b1"], p["g1"], p["bt1"], relu=True)
    y = conv_block(y, p["w2"], p["b2"], p["g2"], p["bt2"], relu=False)
    return x + y


if __name__ == "__main__":
    # ResidualBlock(dim=8): N=4 -> 2 grid steps x 2 images/step.
    N, C, H, W = 4, 8, 16, 16
    key = jax.random.PRNGKey(0)
    ks = jax.random.split(key, 9)

    x = jax.random.normal(ks[0], (N, C, H, W), jnp.float32)
    params = {
        "w1": jax.random.normal(ks[1], (C, C, 3, 3), jnp.float32) * 0.1,
        "b1": jax.random.normal(ks[2], (C,), jnp.float32) * 0.1,
        "g1": 1.0 + 0.1 * jax.random.normal(ks[3], (C,), jnp.float32),
        "bt1": jax.random.normal(ks[4], (C,), jnp.float32) * 0.1,
        "w2": jax.random.normal(ks[5], (C, C, 3, 3), jnp.float32) * 0.1,
        "b2": jax.random.normal(ks[6], (C,), jnp.float32) * 0.1,
        "g2": 1.0 + 0.1 * jax.random.normal(ks[7], (C,), jnp.float32),
        "bt2": jax.random.normal(ks[8], (C,), jnp.float32) * 0.1,
    }

    ref = jax.block_until_ready(reference_forward(x, params))

    packed = prepare_params(params)
    out = jax.block_until_ready(residual_block(x, packed))

    assert out.shape == (N, C, H, W)
    assert np.allclose(np.asarray(out), np.asarray(ref), atol=1e-4, rtol=1e-4), \
        "Pallas kernel does not match JAX reference"
    print("KERNEL_OK")
</pallas_src>

<mosaic_0001>
module attributes {stable_mosaic.version = 11 : i64} {
  func.func @kernel(%arg0: i32, %arg1: memref<2x8x256xf32, #tpu.memory_space<vmem>>, %arg2: memref<8x72xf32, #tpu.memory_space<vmem>>, %arg3: memref<8x72xf32, #tpu.memory_space<vmem>>, %arg4: memref<8x8xf32, #tpu.memory_space<vmem>>, %arg5: memref<2x8x256xf32, #tpu.memory_space<vmem>>) attributes {dimension_semantics = [#tpu.dimension_semantics<parallel>], iteration_bounds = array<i64: 2>, scalar_prefetch = 0 : i64, scratch_operands = 0 : i64, tpu.core_type = #tpu.core_type<tc>, window_params = [{transform_indices = @transform_0, window_bounds = array<i64: 2, 8, 256>}, {pipeline_mode = #tpu.pipeline_mode<synchronous>, transform_indices = @transform_1, window_bounds = array<i64: 8, 72>}, {pipeline_mode = #tpu.pipeline_mode<synchronous>, transform_indices = @transform_2, window_bounds = array<i64: 8, 72>}, {pipeline_mode = #tpu.pipeline_mode<synchronous>, transform_indices = @transform_3, window_bounds = array<i64: 8, 8>}, {transform_indices = @transform_4, window_bounds = array<i64: 2, 8, 256>}]} {
    %0 = tpu.iota {dimensions = array<i32: 1>} : vector<8x256xi32>
    %c15_i32 = arith.constant 15 : i32
    %1 = vector.broadcast %c15_i32 : i32 to vector<8x256xi32>
    %2 = arith.andi %0, %1 : vector<8x256xi32>
    %c16_i32 = arith.constant 16 : i32
    %3 = vector.broadcast %c16_i32 : i32 to vector<8x256xi32>
    %4 = arith.cmpi slt, %0, %3 : vector<8x256xi32>
    %c240_i32 = arith.constant 240 : i32
    %5 = vector.broadcast %c240_i32 : i32 to vector<8x256xi32>
    %6 = arith.cmpi sge, %0, %5 : vector<8x256xi32>
    %c0_i32 = arith.constant 0 : i32
    %7 = vector.broadcast %c0_i32 : i32 to vector<8x256xi32>
    %8 = arith.cmpi eq, %2, %7 : vector<8x256xi32>
    %c15_i32_0 = arith.constant 15 : i32
    %9 = vector.broadcast %c15_i32_0 : i32 to vector<8x256xi32>
    %10 = arith.cmpi eq, %2, %9 : vector<8x256xi32>
    %c0 = arith.constant 0 : index
    %c0_1 = arith.constant 0 : index
    %11 = vector.load %arg2[%c0, %c0_1] : memref<8x72xf32, #tpu.memory_space<vmem>>, vector<8x72xf32>
    %c0_2 = arith.constant 0 : index
    %c0_3 = arith.constant 0 : index
    %12 = vector.load %arg3[%c0_2, %c0_3] : memref<8x72xf32, #tpu.memory_space<vmem>>, vector<8x72xf32>
    %c0_4 = arith.constant 0 : index
    %c0_5 = arith.constant 0 : index
    %13 = vector.load %arg4[%c0_4, %c0_5] : memref<8x8xf32, #tpu.memory_space<vmem>>, vector<8x8xf32>
    %14 = vector.extract_strided_slice %13 {offsets = [0, 0], sizes = [8, 1], strides = [1, 1]} : vector<8x8xf32> to vector<8x1xf32>
    %15 = vector.extract_strided_slice %13 {offsets = [0, 1], sizes = [8, 1], strides = [1, 1]} : vector<8x8xf32> to vector<8x1xf32>
    %16 = vector.extract_strided_slice %13 {offsets = [0, 2], sizes = [8, 1], strides = [1, 1]} : vector<8x8xf32> to vector<8x1xf32>
    %17 = vector.extract_strided_slice %13 {offsets = [0, 3], sizes = [8, 1], strides = [1, 1]} : vector<8x8xf32> to vector<8x1xf32>
    %18 = vector.extract_strided_slice %13 {offsets = [0, 4], sizes = [8, 1], strides = [1, 1]} : vector<8x8xf32> to vector<8x1xf32>
    %19 = vector.extract_strided_slice %13 {offsets = [0, 5], sizes = [8, 1], strides = [1, 1]} : vector<8x8xf32> to vector<8x1xf32>
    %c0_6 = arith.constant 0 : index
    %c0_7 = arith.constant 0 : index
    %c0_8 = arith.constant 0 : index
    %20 = vector.load %arg1[%c0_6, %c0_7, %c0_8] : memref<2x8x256xf32, #tpu.memory_space<vmem>>, vector<1x8x256xf32>
    %21 = vector.shape_cast %20 : vector<1x8x256xf32> to vector<8x256xf32>
    %c240_i32_9 = arith.constant 240 : i32
    %22 = tpu.dynamic_rotate %21 by %c240_i32_9 dim 1 : vector<8x256xf32>, i32 -> vector<8x256xf32>
    %c16_i32_10 = arith.constant 16 : i32
    %23 = tpu.dynamic_rotate %21 by %c16_i32_10 dim 1 : vector<8x256xf32>, i32 -> vector<8x256xf32>
    %24 = arith.select %4, %22, %23 : vector<8x256xi1>, vector<8x256xf32>
    %25 = arith.select %6, %23, %22 : vector<8x256xi1>, vector<8x256xf32>
    %c1_i32 = arith.constant 1 : i32
    %26 = tpu.dynamic_rotate %24 by %c1_i32 dim 1 : vector<8x256xf32>, i32 -> vector<8x256xf32>
    %c255_i32 = arith.constant 255 : i32
    %27 = tpu.dynamic_rotate %24 by %c255_i32 dim 1 : vector<8x256xf32>, i32 -> vector<8x256xf32>
    %28 = arith.select %8, %27, %26 : vector<8x256xi1>, vector<8x256xf32>
    %29 = arith.select %10, %26, %27 : vector<8x256xi1>, vector<8x256xf32>
    %c1_i32_11 = arith.constant 1 : i32
    %30 = tpu.dynamic_rotate %21 by %c1_i32_11 dim 1 : vector<8x256xf32>, i32 -> vector<8x256xf32>
    %c255_i32_12 = arith.constant 255 : i32
    %31 = tpu.dynamic_rotate %21 by %c255_i32_12 dim 1 : vector<8x256xf32>, i32 -> vector<8x256xf32>
    %32 = arith.select %8, %31, %30 : vector<8x256xi1>, vector<8x256xf32>
    %33 = arith.select %10, %30, %31 : vector<8x256xi1>, vector<8x256xf32>
    %c1_i32_13 = arith.constant 1 : i32
    %34 = tpu.dynamic_rotate %25 by %c1_i32_13 dim 1 : vector<8x256xf32>, i32 -> vector<8x256xf32>
    %c255_i32_14 = arith.constant 255 : i32
    %35 = tpu.dynamic_rotate %25 by %c255_i32_14 dim 1 : vector<8x256xf32>, i32 -> vector<8x256xf32>
    %36 = arith.select %8, %35, %34 : vector<8x256xi1>, vector<8x256xf32>
    %37 = arith.select %10, %34, %35 : vector<8x256xi1>, vector<8x256xf32>
    %38 = tpu.concatenate %28, %24, %29, %32, %21, %33, %36, %25, %37 in 0 : vector<8x256xf32>, vector<8x256xf32>, vector<8x256xf32>, vector<8x256xf32>, vector<8x256xf32>, vector<8x256xf32>, vector<8x256xf32>, vector<8x256xf32>, vector<8x256xf32> -> vector<72x256xf32>
    %cst = arith.constant dense<0.000000e+00> : vector<8x256xf32>
    %39 = tpu.matmul %11, %38, %cst {dimension_numbers = #tpu.dot_dimension_numbers<[1], [0], [0], [1], [0, 0, 1, 1], [], []>} : vector<8x72xf32>, vector<72x256xf32>, vector<8x256xf32> -> vector<8x256xf32>
    %40 = vector.broadcast %14 : vector<8x1xf32> to vector<8x256xf32>
    %41 = arith.addf %39, %40 : vector<8x256xf32>
    %cst_15 = arith.constant dense<0.000000e+00> : vector<8xf32>
    %42 = vector.multi_reduction <add>, %41, %cst_15 [1] : vector<8x256xf32> to vector<8xf32>
    %43 = vector.shape_cast %42 : vector<8xf32> to vector<8x1xf32>
    %cst_16 = arith.constant 3.906250e-03 : f32
    %44 = vector.broadcast %cst_16 : f32 to vector<8x1xf32>
    %45 = arith.mulf %43, %44 : vector<8x1xf32>
    %46 = arith.mulf %41, %41 : vector<8x256xf32>
    %cst_17 = arith.constant dense<0.000000e+00> : vector<8xf32>
    %47 = vector.multi_reduction <add>, %46, %cst_17 [1] : vector<8x256xf32> to vector<8xf32>
    %48 = vector.shape_cast %47 : vector<8xf32> to vector<8x1xf32>
    %cst_18 = arith.constant 3.906250e-03 : f32
    %49 = vector.broadcast %cst_18 : f32 to vector<8x1xf32>
    %50 = arith.mulf %48, %49 : vector<8x1xf32>
    %51 = arith.mulf %45, %45 : vector<8x1xf32>
    %52 = arith.subf %50, %51 : vector<8x1xf32>
    %cst_19 = arith.constant 0.000000e+00 : f32
    %53 = vector.broadcast %cst_19 : f32 to vector<8x1xf32>
    %54 = arith.maximumf %52, %53 : vector<8x1xf32>
    %cst_20 = arith.constant 9.99999974E-6 : f32
    %55 = vector.broadcast %cst_20 : f32 to vector<8x1xf32>
    %56 = arith.addf %54, %55 : vector<8x1xf32>
    %57 = math.rsqrt %56 : vector<8x1xf32>
    %58 = arith.mulf %15, %57 : vector<8x1xf32>
    %59 = arith.mulf %45, %58 : vector<8x1xf32>
    %60 = arith.subf %16, %59 : vector<8x1xf32>
    %61 = vector.broadcast %58 : vector<8x1xf32> to vector<8x256xf32>
    %62 = arith.mulf %41, %61 : vector<8x256xf32>
    %63 = vector.broadcast %60 : vector<8x1xf32> to vector<8x256xf32>
    %64 = arith.addf %62, %63 : vector<8x256xf32>
    %cst_21 = arith.constant 0.000000e+00 : f32
    %65 = vector.broadcast %cst_21 : f32 to vector<8x256xf32>
    %66 = arith.maximumf %64, %65 : vector<8x256xf32>
    %c240_i32_22 = arith.constant 240 : i32
    %67 = tpu.dynamic_rotate %66 by %c240_i32_22 dim 1 : vector<8x256xf32>, i32 -> vector<8x256xf32>
    %c16_i32_23 = arith.constant 16 : i32
    %68 = tpu.dynamic_rotate %66 by %c16_i32_23 dim 1 : vector<8x256xf32>, i32 -> vector<8x256xf32>
    %69 = arith.select %4, %67, %68 : vector<8x256xi1>, vector<8x256xf32>
    %70 = arith.select %6, %68, %67 : vector<8x256xi1>, vector<8x256xf32>
    %c1_i32_24 = arith.constant 1 : i32
    %71 = tpu.dynamic_rotate %69 by %c1_i32_24 dim 1 : vector<8x256xf32>, i32 -> vector<8x256xf32>
    %c255_i32_25 = arith.constant 255 : i32
    %72 = tpu.dynamic_rotate %69 by %c255_i32_25 dim 1 : vector<8x256xf32>, i32 -> vector<8x256xf32>
    %73 = arith.select %8, %72, %71 : vector<8x256xi1>, vector<8x256xf32>
    %74 = arith.select %10, %71, %72 : vector<8x256xi1>, vector<8x256xf32>
    %c1_i32_26 = arith.constant 1 : i32
    %75 = tpu.dynamic_rotate %66 by %c1_i32_26 dim 1 : vector<8x256xf32>, i32 -> vector<8x256xf32>
    %c255_i32_27 = arith.constant 255 : i32
    %76 = tpu.dynamic_rotate %66 by %c255_i32_27 dim 1 : vector<8x256xf32>, i32 -> vector<8x256xf32>
    %77 = arith.select %8, %76, %75 : vector<8x256xi1>, vector<8x256xf32>
    %78 = arith.select %10, %75, %76 : vector<8x256xi1>, vector<8x256xf32>
    %c1_i32_28 = arith.constant 1 : i32
    %79 = tpu.dynamic_rotate %70 by %c1_i32_28 dim 1 : vector<8x256xf32>, i32 -> vector<8x256xf32>
    %c255_i32_29 = arith.constant 255 : i32
    %80 = tpu.dynamic_rotate %70 by %c255_i32_29 dim 1 : vector<8x256xf32>, i32 -> vector<8x256xf32>
    %81 = arith.select %8, %80, %79 : vector<8x256xi1>, vector<8x256xf32>
    %82 = arith.select %10, %79, %80 : vector<8x256xi1>, vector<8x256xf32>
    %83 = tpu.concatenate %73, %69, %74, %77, %66, %78, %81, %70, %82 in 0 : vector<8x256xf32>, vector<8x256xf32>, vector<8x256xf32>, vector<8x256xf32>, vector<8x256xf32>, vector<8x256xf32>, vector<8x256xf32>, vector<8x256xf32>, vector<8x256xf32> -> vector<72x256xf32>
    %cst_30 = arith.constant dense<0.000000e+00> : vector<8x256xf32>
    %84 = tpu.matmul %12, %83, %cst_30 {dimension_numbers = #tpu.dot_dimension_numbers<[1], [0], [0], [1], [0, 0, 1, 1], [], []>} : vector<8x72xf32>, vector<72x256xf32>, vector<8x256xf32> -> vector<8x256xf32>
    %85 = vector.broadcast %17 : vector<8x1xf32> to vector<8x256xf32>
    %86 = arith.addf %84, %85 : vector<8x256xf32>
    %cst_31 = arith.constant dense<0.000000e+00> : vector<8xf32>
    %87 = vector.multi_reduction <add>, %86, %cst_31 [1] : vector<8x256xf32> to vector<8xf32>
    %88 = vector.shape_cast %87 : vector<8xf32> to vector<8x1xf32>
    %cst_32 = arith.constant 3.906250e-03 : f32
    %89 = vector.broadcast %cst_32 : f32 to vector<8x1xf32>
    %90 = arith.mulf %88, %89 : vector<8x1xf32>
    %91 = arith.mulf %86, %86 : vector<8x256xf32>
    %cst_33 = arith.constant dense<0.000000e+00> : vector<8xf32>
    %92 = vector.multi_reduction <add>, %91, %cst_33 [1] : vector<8x256xf32> to vector<8xf32>
    %93 = vector.shape_cast %92 : vector<8xf32> to vector<8x1xf32>
    %cst_34 = arith.constant 3.906250e-03 : f32
    %94 = vector.broadcast %cst_34 : f32 to vector<8x1xf32>
    %95 = arith.mulf %93, %94 : vector<8x1xf32>
    %96 = arith.mulf %90, %90 : vector<8x1xf32>
    %97 = arith.subf %95, %96 : vector<8x1xf32>
    %cst_35 = arith.constant 0.000000e+00 : f32
    %98 = vector.broadcast %cst_35 : f32 to vector<8x1xf32>
    %99 = arith.maximumf %97, %98 : vector<8x1xf32>
    %cst_36 = arith.constant 9.99999974E-6 : f32
    %100 = vector.broadcast %cst_36 : f32 to vector<8x1xf32>
    %101 = arith.addf %99, %100 : vector<8x1xf32>
    %102 = math.rsqrt %101 : vector<8x1xf32>
    %103 = arith.mulf %18, %102 : vector<8x1xf32>
    %104 = arith.mulf %90, %103 : vector<8x1xf32>
    %105 = arith.subf %19, %104 : vector<8x1xf32>
    %106 = vector.broadcast %103 : vector<8x1xf32> to vector<8x256xf32>
    %107 = arith.mulf %86, %106 : vector<8x256xf32>
    %108 = vector.broadcast %105 : vector<8x1xf32> to vector<8x256xf32>
    %109 = arith.addf %107, %108 : vector<8x256xf32>
    %110 = arith.addf %21, %109 : vector<8x256xf32>
    %c0_37 = arith.constant 0 : index
    %c0_38 = arith.constant 0 : index
    %c0_39 = arith.constant 0 : index
    %111 = vector.load %arg5[%c0_37, %c0_38, %c0_39] : memref<2x8x256xf32, #tpu.memory_space<vmem>>, vector<1x8x256xf32>
    %112 = vector.shape_cast %111 : vector<1x8x256xf32> to vector<8x256xf32>
    %113 = vector.shape_cast %110 : vector<8x256xf32> to vector<1x8x256xf32>
    tpu.vector_store %arg5[%c0_37, %c0_38, %c0_39], %113 {strides = array<i32>} : memref<2x8x256xf32, #tpu.memory_space<vmem>>, vector<1x8x256xf32>,
    %c1 = arith.constant 1 : index
    %c0_40 = arith.constant 0 : index
    %c0_41 = arith.constant 0 : index
    %114 = vector.load %arg1[%c1, %c0_40, %c0_41] : memref<2x8x256xf32, #tpu.memory_space<vmem>>, vector<1x8x256xf32>
    %115 = vector.shape_cast %114 : vector<1x8x256xf32> to vector<8x256xf32>
    %c240_i32_42 = arith.constant 240 : i32
    %116 = tpu.dynamic_rotate %115 by %c240_i32_42 dim 1 : vector<8x256xf32>, i32 -> vector<8x256xf32>
    %c16_i32_43 = arith.constant 16 : i32
    %117 = tpu.dynamic_rotate %115 by %c16_i32_43 dim 1 : vector<8x256xf32>, i32 -> vector<8x256xf32>
    %118 = arith.select %4, %116, %117 : vector<8x256xi1>, vector<8x256xf32>
    %119 = arith.select %6, %117, %116 : vector<8x256xi1>, vector<8x256xf32>
    %c1_i32_44 = arith.constant 1 : i32
    %120 = tpu.dynamic_rotate %118 by %c1_i32_44 dim 1 : vector<8x256xf32>, i32 -> vector<8x256xf32>
    %c255_i32_45 = arith.constant 255 : i32
    %121 = tpu.dynamic_rotate %118 by %c255_i32_45 dim 1 : vector<8x256xf32>, i32 -> vector<8x256xf32>
    %122 = arith.select %8, %121, %120 : vector<8x256xi1>, vector<8x256xf32>
    %123 = arith.select %10, %120, %121 : vector<8x256xi1>, vector<8x256xf32>
    %c1_i32_46 = arith.constant 1 : i32
    %124 = tpu.dynamic_rotate %115 by %c1_i32_46 dim 1 : vector<8x256xf32>, i32 -> vector<8x256xf32>
    %c255_i32_47 = arith.constant 255 : i32
    %125 = tpu.dynamic_rotate %115 by %c255_i32_47 dim 1 : vector<8x256xf32>, i32 -> vector<8x256xf32>
    %126 = arith.select %8, %125, %124 : vector<8x256xi1>, vector<8x256xf32>
    %127 = arith.select %10, %124, %125 : vector<8x256xi1>, vector<8x256xf32>
    %c1_i32_48 = arith.constant 1 : i32
    %128 = tpu.dynamic_rotate %119 by %c1_i32_48 dim 1 : vector<8x256xf32>, i32 -> vector<8x256xf32>
    %c255_i32_49 = arith.constant 255 : i32
    %129 = tpu.dynamic_rotate %119 by %c255_i32_49 dim 1 : vector<8x256xf32>, i32 -> vector<8x256xf32>
    %130 = arith.select %8, %129, %128 : vector<8x256xi1>, vector<8x256xf32>
    %131 = arith.select %10, %128, %129 : vector<8x256xi1>, vector<8x256xf32>
    %132 = tpu.concatenate %122, %118, %123, %126, %115, %127, %130, %119, %131 in 0 : vector<8x256xf32>, vector<8x256xf32>, vector<8x256xf32>, vector<8x256xf32>, vector<8x256xf32>, vector<8x256xf32>, vector<8x256xf32>, vector<8x256xf32>, vector<8x256xf32> -> vector<72x256xf32>
    %cst_50 = arith.constant dense<0.000000e+00> : vector<8x256xf32>
    %133 = tpu.matmul %11, %132, %cst_50 {dimension_numbers = #tpu.dot_dimension_numbers<[1], [0], [0], [1], [0, 0, 1, 1], [], []>} : vector<8x72xf32>, vector<72x256xf32>, vector<8x256xf32> -> vector<8x256xf32>
    %134 = vector.broadcast %14 : vector<8x1xf32> to vector<8x256xf32>
    %135 = arith.addf %133, %134 : vector<8x256xf32>
    %cst_51 = arith.constant dense<0.000000e+00> : vector<8xf32>
    %136 = vector.multi_reduction <add>, %135, %cst_51 [1] : vector<8x256xf32> to vector<8xf32>
    %137 = vector.shape_cast %136 : vector<8xf32> to vector<8x1xf32>
    %cst_52 = arith.constant 3.906250e-03 : f32
    %138 = vector.broadcast %cst_52 : f32 to vector<8x1xf32>
    %139 = arith.mulf %137, %138 : vector<8x1xf32>
    %140 = arith.mulf %135, %135 : vector<8x256xf32>
    %cst_53 = arith.constant dense<0.000000e+00> : vector<8xf32>
    %141 = vector.multi_reduction <add>, %140, %cst_53 [1] : vector<8x256xf32> to vector<8xf32>
    %142 = vector.shape_cast %141 : vector<8xf32> to vector<8x1xf32>
    %cst_54 = arith.constant 3.906250e-03 : f32
    %143 = vector.broadcast %cst_54 : f32 to vector<8x1xf32>
    %144 = arith.mulf %142, %143 : vector<8x1xf32>
    %145 = arith.mulf %139, %139 : vector<8x1xf32>
    %146 = arith.subf %144, %145 : vector<8x1xf32>
    %cst_55 = arith.constant 0.000000e+00 : f32
    %147 = vector.broadcast %cst_55 : f32 to vector<8x1xf32>
    %148 = arith.maximumf %146, %147 : vector<8x1xf32>
    %cst_56 = arith.constant 9.99999974E-6 : f32
    %149 = vector.broadcast %cst_56 : f32 to vector<8x1xf32>
    %150 = arith.addf %148, %149 : vector<8x1xf32>
    %151 = math.rsqrt %150 : vector<8x1xf32>
    %152 = arith.mulf %15, %151 : vector<8x1xf32>
    %153 = arith.mulf %139, %152 : vector<8x1xf32>
    %154 = arith.subf %16, %153 : vector<8x1xf32>
    %155 = vector.broadcast %152 : vector<8x1xf32> to vector<8x256xf32>
    %156 = arith.mulf %135, %155 : vector<8x256xf32>
    %157 = vector.broadcast %154 : vector<8x1xf32> to vector<8x256xf32>
    %158 = arith.addf %156, %157 : vector<8x256xf32>
    %cst_57 = arith.constant 0.000000e+00 : f32
    %159 = vector.broadcast %cst_57 : f32 to vector<8x256xf32>
    %160 = arith.maximumf %158, %159 : vector<8x256xf32>
    %c240_i32_58 = arith.constant 240 : i32
    %161 = tpu.dynamic_rotate %160 by %c240_i32_58 dim 1 : vector<8x256xf32>, i32 -> vector<8x256xf32>
    %c16_i32_59 = arith.constant 16 : i32
    %162 = tpu.dynamic_rotate %160 by %c16_i32_59 dim 1 : vector<8x256xf32>, i32 -> vector<8x256xf32>
    %163 = arith.select %4, %161, %162 : vector<8x256xi1>, vector<8x256xf32>
    %164 = arith.select %6, %162, %161 : vector<8x256xi1>, vector<8x256xf32>
    %c1_i32_60 = arith.constant 1 : i32
    %165 = tpu.dynamic_rotate %163 by %c1_i32_60 dim 1 : vector<8x256xf32>, i32 -> vector<8x256xf32>
    %c255_i32_61 = arith.constant 255 : i32
    %166 = tpu.dynamic_rotate %163 by %c255_i32_61 dim 1 : vector<8x256xf32>, i32 -> vector<8x256xf32>
    %167 = arith.select %8, %166, %165 : vector<8x256xi1>, vector<8x256xf32>
    %168 = arith.select %10, %165, %166 : vector<8x256xi1>, vector<8x256xf32>
    %c1_i32_62 = arith.constant 1 : i32
    %169 = tpu.dynamic_rotate %160 by %c1_i32_62 dim 1 : vector<8x256xf32>, i32 -> vector<8x256xf32>
    %c255_i32_63 = arith.constant 255 : i32
    %170 = tpu.dynamic_rotate %160 by %c255_i32_63 dim 1 : vector<8x256xf32>, i32 -> vector<8x256xf32>
    %171 = arith.select %8, %170, %169 : vector<8x256xi1>, vector<8x256xf32>
    %172 = arith.select %10, %169, %170 : vector<8x256xi1>, vector<8x256xf32>
    %c1_i32_64 = arith.constant 1 : i32
    %173 = tpu.dynamic_rotate %164 by %c1_i32_64 dim 1 : vector<8x256xf32>, i32 -> vector<8x256xf32>
    %c255_i32_65 = arith.constant 255 : i32
    %174 = tpu.dynamic_rotate %164 by %c255_i32_65 dim 1 : vector<8x256xf32>, i32 -> vector<8x256xf32>
    %175 = arith.select %8, %174, %173 : vector<8x256xi1>, vector<8x256xf32>
    %176 = arith.select %10, %173, %174 : vector<8x256xi1>, vector<8x256xf32>
    %177 = tpu.concatenate %167, %163, %168, %171, %160, %172, %175, %164, %176 in 0 : vector<8x256xf32>, vector<8x256xf32>, vector<8x256xf32>, vector<8x256xf32>, vector<8x256xf32>, vector<8x256xf32>, vector<8x256xf32>, vector<8x256xf32>, vector<8x256xf32> -> vector<72x256xf32>
    %cst_66 = arith.constant dense<0.000000e+00> : vector<8x256xf32>
    %178 = tpu.matmul %12, %177, %cst_66 {dimension_numbers = #tpu.dot_dimension_numbers<[1], [0], [0], [1], [0, 0, 1, 1], [], []>} : vector<8x72xf32>, vector<72x256xf32>, vector<8x256xf32> -> vector<8x256xf32>
    %179 = vector.broadcast %17 : vector<8x1xf32> to vector<8x256xf32>
    %180 = arith.addf %178, %179 : vector<8x256xf32>
    %cst_67 = arith.constant dense<0.000000e+00> : vector<8xf32>
    %181 = vector.multi_reduction <add>, %180, %cst_67 [1] : vector<8x256xf32> to vector<8xf32>
    %182 = vector.shape_cast %181 : vector<8xf32> to vector<8x1xf32>
    %cst_68 = arith.constant 3.906250e-03 : f32
    %183 = vector.broadcast %cst_68 : f32 to vector<8x1xf32>
    %184 = arith.mulf %182, %183 : vector<8x1xf32>
    %185 = arith.mulf %180, %180 : vector<8x256xf32>
    %cst_69 = arith.constant dense<0.000000e+00> : vector<8xf32>
    %186 = vector.multi_reduction <add>, %185, %cst_69 [1] : vector<8x256xf32> to vector<8xf32>
    %187 = vector.shape_cast %186 : vector<8xf32> to vector<8x1xf32>
    %cst_70 = arith.constant 3.906250e-03 : f32
    %188 = vector.broadcast %cst_70 : f32 to vector<8x1xf32>
    %189 = arith.mulf %187, %188 : vector<8x1xf32>
    %190 = arith.mulf %184, %184 : vector<8x1xf32>
    %191 = arith.subf %189, %190 : vector<8x1xf32>
    %cst_71 = arith.constant 0.000000e+00 : f32
    %192 = vector.broadcast %cst_71 : f32 to vector<8x1xf32>
    %193 = arith.maximumf %191, %192 : vector<8x1xf32>
    %cst_72 = arith.constant 9.99999974E-6 : f32
    %194 = vector.broadcast %cst_72 : f32 to vector<8x1xf32>
    %195 = arith.addf %193, %194 : vector<8x1xf32>
    %196 = math.rsqrt %195 : vector<8x1xf32>
    %197 = arith.mulf %18, %196 : vector<8x1xf32>
    %198 = arith.mulf %184, %197 : vector<8x1xf32>
    %199 = arith.subf %19, %198 : vector<8x1xf32>
    %200 = vector.broadcast %197 : vector<8x1xf32> to vector<8x256xf32>
    %201 = arith.mulf %180, %200 : vector<8x256xf32>
    %202 = vector.broadcast %199 : vector<8x1xf32> to vector<8x256xf32>
    %203 = arith.addf %201, %202 : vector<8x256xf32>
    %204 = arith.addf %115, %203 : vector<8x256xf32>
    %c1_73 = arith.constant 1 : index
    %c0_74 = arith.constant 0 : index
    %c0_75 = arith.constant 0 : index
    %205 = vector.load %arg5[%c1_73, %c0_74, %c0_75] : memref<2x8x256xf32, #tpu.memory_space<vmem>>, vector<1x8x256xf32>
    %206 = vector.shape_cast %205 : vector<1x8x256xf32> to vector<8x256xf32>
    %207 = vector.shape_cast %204 : vector<8x256xf32> to vector<1x8x256xf32>
    tpu.vector_store %arg5[%c1_73, %c0_74, %c0_75], %207 {strides = array<i32>} : memref<2x8x256xf32, #tpu.memory_space<vmem>>, vector<1x8x256xf32>,
    return
  }
  func.func @transform_0(%arg0: i32) -> (i32, i32, i32) {
    %c0_i32 = arith.constant 0 : i32
    %c0_i32_0 = arith.constant 0 : i32
    %c0_i32_1 = arith.constant 0 : i32
    return %arg0, %c0_i32, %c0_i32_0 : i32, i32, i32
  }
  func.func @transform_1(%arg0: i32) -> (i32, i32) {
    %c0_i32 = arith.constant 0 : i32
    %c0_i32_0 = arith.constant 0 : i32
    %c0_i32_1 = arith.constant 0 : i32
    return %c0_i32, %c0_i32_0 : i32, i32
  }
  func.func @transform_2(%arg0: i32) -> (i32, i32) {
    %c0_i32 = arith.constant 0 : i32
    %c0_i32_0 = arith.constant 0 : i32
    %c0_i32_1 = arith.constant 0 : i32
    return %c0_i32, %c0_i32_0 : i32, i32
  }
  func.func @transform_3(%arg0: i32) -> (i32, i32) {
    %c0_i32 = arith.constant 0 : i32
    %c0_i32_0 = arith.constant 0 : i32
    %c0_i32_1 = arith.constant 0 : i32
    return %c0_i32, %c0_i32_0 : i32, i32
  }
  func.func @transform_4(%arg0: i32) -> (i32, i32, i32) {
    %c0_i32 = arith.constant 0 : i32
    %c0_i32_0 = arith.constant 0 : i32
    %c0_i32_1 = arith.constant 0 : i32
    return %arg0, %c0_i32, %c0_i32_0 : i32, i32, i32
  }
}

module attributes {stable_mosaic.version = 11 : i64} {
  func.func @kernel(%arg0: i32, %arg1: memref<2x8x256xf32, #tpu.memory_space<vmem>>, %arg2: memref<8x72xf32, #tpu.memory_space<vmem>>, %arg3: memref<8x72xf32, #tpu.memory_space<vmem>>, %arg4: memref<8x8xf32, #tpu.memory_space<vmem>>, %arg5: memref<2x8x256xf32, #tpu.memory_space<vmem>>) attributes {dimension_semantics = [#tpu.dimension_semantics<parallel>], iteration_bounds = array<i64: 2>, scalar_prefetch = 0 : i64, scratch_operands = 0 : i64, tpu.core_type = #tpu.core_type<tc>, window_params = [{transform_indices = @transform_0, window_bounds = array<i64: 2, 8, 256>}, {pipeline_mode = #tpu.pipeline_mode<synchronous>, transform_indices = @transform_1, window_bounds = array<i64: 8, 72>}, {pipeline_mode = #tpu.pipeline_mode<synchronous>, transform_indices = @transform_2, window_bounds = array<i64: 8, 72>}, {pipeline_mode = #tpu.pipeline_mode<synchronous>, transform_indices = @transform_3, window_bounds = array<i64: 8, 8>}, {transform_indices = @transform_4, window_bounds = array<i64: 2, 8, 256>}]} {
    %0 = tpu.iota {dimensions = array<i32: 1>} : vector<8x256xi32>
    %c15_i32 = arith.constant 15 : i32
    %1 = vector.broadcast %c15_i32 : i32 to vector<8x256xi32>
    %2 = arith.andi %0, %1 : vector<8x256xi32>
    %c16_i32 = arith.constant 16 : i32
    %3 = vector.broadcast %c16_i32 : i32 to vector<8x256xi32>
    %4 = arith.cmpi slt, %0, %3 : vector<8x256xi32>
    %c240_i32 = arith.constant 240 : i32
    %5 = vector.broadcast %c240_i32 : i32 to vector<8x256xi32>
    %6 = arith.cmpi sge, %0, %5 : vector<8x256xi32>
    %c0_i32 = arith.constant 0 : i32
    %7 = vector.broadcast %c0_i32 : i32 to vector<8x256xi32>
    %8 = arith.cmpi eq, %2, %7 : vector<8x256xi32>
    %c15_i32_0 = arith.constant 15 : i32
    %9 = vector.broadcast %c15_i32_0 : i32 to vector<8x256xi32>
    %10 = arith.cmpi eq, %2, %9 : vector<8x256xi32>
    %c0 = arith.constant 0 : index
    %c0_1 = arith.constant 0 : index
    %11 = vector.load %arg2[%c0, %c0_1] : memref<8x72xf32, #tpu.memory_space<vmem>>, vector<8x72xf32>
    %c0_2 = arith.constant 0 : index
    %c0_3 = arith.constant 0 : index
    %12 = vector.load %arg3[%c0_2, %c0_3] : memref<8x72xf32, #tpu.memory_space<vmem>>, vector<8x72xf32>
    %c0_4 = arith.constant 0 : index
    %c0_5 = arith.constant 0 : index
    %13 = vector.load %arg4[%c0_4, %c0_5] : memref<8x8xf32, #tpu.memory_space<vmem>>, vector<8x8xf32>
    %14 = vector.extract_strided_slice %13 {offsets = [0, 0], sizes = [8, 1], strides = [1, 1]} : vector<8x8xf32> to vector<8x1xf32>
    %15 = vector.extract_strided_slice %13 {offsets = [0, 1], sizes = [8, 1], strides = [1, 1]} : vector<8x8xf32> to vector<8x1xf32>
    %16 = vector.extract_strided_slice %13 {offsets = [0, 2], sizes = [8, 1], strides = [1, 1]} : vector<8x8xf32> to vector<8x1xf32>
    %17 = vector.extract_strided_slice %13 {offsets = [0, 3], sizes = [8, 1], strides = [1, 1]} : vector<8x8xf32> to vector<8x1xf32>
    %18 = vector.extract_strided_slice %13 {offsets = [0, 4], sizes = [8, 1], strides = [1, 1]} : vector<8x8xf32> to vector<8x1xf32>
    %19 = vector.extract_strided_slice %13 {offsets = [0, 5], sizes = [8, 1], strides = [1, 1]} : vector<8x8xf32> to vector<8x1xf32>
    %c0_6 = arith.constant 0 : index
    %c0_7 = arith.constant 0 : index
    %c0_8 = arith.constant 0 : index
    %20 = vector.load %arg1[%c0_6, %c0_7, %c0_8] : memref<2x8x256xf32, #tpu.memory_space<vmem>>, vector<1x8x256xf32>
    %21 = vector.shape_cast %20 : vector<1x8x256xf32> to vector<8x256xf32>
    %c240_i32_9 = arith.constant 240 : i32
    %22 = tpu.dynamic_rotate %21 by %c240_i32_9 dim 1 : vector<8x256xf32>, i32 -> vector<8x256xf32>
    %c16_i32_10 = arith.constant 16 : i32
    %23 = tpu.dynamic_rotate %21 by %c16_i32_10 dim 1 : vector<8x256xf32>, i32 -> vector<8x256xf32>
    %24 = arith.select %4, %22, %23 : vector<8x256xi1>, vector<8x256xf32>
    %25 = arith.select %6, %23, %22 : vector<8x256xi1>, vector<8x256xf32>
    %c1_i32 = arith.constant 1 : i32
    %26 = tpu.dynamic_rotate %24 by %c1_i32 dim 1 : vector<8x256xf32>, i32 -> vector<8x256xf32>
    %c255_i32 = arith.constant 255 : i32
    %27 = tpu.dynamic_rotate %24 by %c255_i32 dim 1 : vector<8x256xf32>, i32 -> vector<8x256xf32>
    %28 = arith.select %8, %27, %26 : vector<8x256xi1>, vector<8x256xf32>
    %29 = arith.select %10, %26, %27 : vector<8x256xi1>, vector<8x256xf32>
    %c1_i32_11 = arith.constant 1 : i32
    %30 = tpu.dynamic_rotate %21 by %c1_i32_11 dim 1 : vector<8x256xf32>, i32 -> vector<8x256xf32>
    %c255_i32_12 = arith.constant 255 : i32
    %31 = tpu.dynamic_rotate %21 by %c255_i32_12 dim 1 : vector<8x256xf32>, i32 -> vector<8x256xf32>
    %32 = arith.select %8, %31, %30 : vector<8x256xi1>, vector<8x256xf32>
    %33 = arith.select %10, %30, %31 : vector<8x256xi1>, vector<8x256xf32>
    %c1_i32_13 = arith.constant 1 : i32
    %34 = tpu.dynamic_rotate %25 by %c1_i32_13 dim 1 : vector<8x256xf32>, i32 -> vector<8x256xf32>
    %c255_i32_14 = arith.constant 255 : i32
    %35 = tpu.dynamic_rotate %25 by %c255_i32_14 dim 1 : vector<8x256xf32>, i32 -> vector<8x256xf32>
    %36 = arith.select %8, %35, %34 : vector<8x256xi1>, vector<8x256xf32>
    %37 = arith.select %10, %34, %35 : vector<8x256xi1>, vector<8x256xf32>
    %38 = tpu.concatenate %28, %24, %29, %32, %21, %33, %36, %25, %37 in 0 : vector<8x256xf32>, vector<8x256xf32>, vector<8x256xf32>, vector<8x256xf32>, vector<8x256xf32>, vector<8x256xf32>, vector<8x256xf32>, vector<8x256xf32>, vector<8x256xf32> -> vector<72x256xf32>
    %cst = arith.constant dense<0.000000e+00> : vector<8x256xf32>
    %39 = tpu.matmul %11, %38, %cst {dimension_numbers = #tpu.dot_dimension_numbers<[1], [0], [0], [1], [0, 0, 1, 1], [], []>} : vector<8x72xf32>, vector<72x256xf32>, vector<8x256xf32> -> vector<8x256xf32>
    %40 = vector.broadcast %14 : vector<8x1xf32> to vector<8x256xf32>
    %41 = arith.addf %39, %40 : vector<8x256xf32>
    %cst_15 = arith.constant dense<0.000000e+00> : vector<8xf32>
    %42 = vector.multi_reduction <add>, %41, %cst_15 [1] : vector<8x256xf32> to vector<8xf32>
    %43 = vector.shape_cast %42 : vector<8xf32> to vector<8x1xf32>
    %cst_16 = arith.constant 3.906250e-03 : f32
    %44 = vector.broadcast %cst_16 : f32 to vector<8x1xf32>
    %45 = arith.mulf %43, %44 : vector<8x1xf32>
    %46 = arith.mulf %41, %41 : vector<8x256xf32>
    %cst_17 = arith.constant dense<0.000000e+00> : vector<8xf32>
    %47 = vector.multi_reduction <add>, %46, %cst_17 [1] : vector<8x256xf32> to vector<8xf32>
    %48 = vector.shape_cast %47 : vector<8xf32> to vector<8x1xf32>
    %cst_18 = arith.constant 3.906250e-03 : f32
    %49 = vector.broadcast %cst_18 : f32 to vector<8x1xf32>
    %50 = arith.mulf %48, %49 : vector<8x1xf32>
    %51 = arith.mulf %45, %45 : vector<8x1xf32>
    %52 = arith.subf %50, %51 : vector<8x1xf32>
    %cst_19 = arith.constant 0.000000e+00 : f32
    %53 = vector.broadcast %cst_19 : f32 to vector<8x1xf32>
    %54 = arith.maximumf %52, %53 : vector<8x1xf32>
    %cst_20 = arith.constant 9.99999974E-6 : f32
    %55 = vector.broadcast %cst_20 : f32 to vector<8x1xf32>
    %56 = arith.addf %54, %55 : vector<8x1xf32>
    %57 = math.rsqrt %56 : vector<8x1xf32>
    %58 = arith.mulf %15, %57 : vector<8x1xf32>
    %59 = arith.mulf %45, %58 : vector<8x1xf32>
    %60 = arith.subf %16, %59 : vector<8x1xf32>
    %61 = vector.broadcast %58 : vector<8x1xf32> to vector<8x256xf32>
    %62 = arith.mulf %41, %61 : vector<8x256xf32>
    %63 = vector.broadcast %60 : vector<8x1xf32> to vector<8x256xf32>
    %64 = arith.addf %62, %63 : vector<8x256xf32>
    %cst_21 = arith.constant 0.000000e+00 : f32
    %65 = vector.broadcast %cst_21 : f32 to vector<8x256xf32>
    %66 = arith.maximumf %64, %65 : vector<8x256xf32>
    %c240_i32_22 = arith.constant 240 : i32
    %67 = tpu.dynamic_rotate %66 by %c240_i32_22 dim 1 : vector<8x256xf32>, i32 -> vector<8x256xf32>
    %c16_i32_23 = arith.constant 16 : i32
    %68 = tpu.dynamic_rotate %66 by %c16_i32_23 dim 1 : vector<8x256xf32>, i32 -> vector<8x256xf32>
    %69 = arith.select %4, %67, %68 : vector<8x256xi1>, vector<8x256xf32>
    %70 = arith.select %6, %68, %67 : vector<8x256xi1>, vector<8x256xf32>
    %c1_i32_24 = arith.constant 1 : i32
    %71 = tpu.dynamic_rotate %69 by %c1_i32_24 dim 1 : vector<8x256xf32>, i32 -> vector<8x256xf32>
    %c255_i32_25 = arith.constant 255 : i32
    %72 = tpu.dynamic_rotate %69 by %c255_i32_25 dim 1 : vector<8x256xf32>, i32 -> vector<8x256xf32>
    %73 = arith.select %8, %72, %71 : vector<8x256xi1>, vector<8x256xf32>
    %74 = arith.select %10, %71, %72 : vector<8x256xi1>, vector<8x256xf32>
    %c1_i32_26 = arith.constant 1 : i32
    %75 = tpu.dynamic_rotate %66 by %c1_i32_26 dim 1 : vector<8x256xf32>, i32 -> vector<8x256xf32>
    %c255_i32_27 = arith.constant 255 : i32
    %76 = tpu.dynamic_rotate %66 by %c255_i32_27 dim 1 : vector<8x256xf32>, i32 -> vector<8x256xf32>
    %77 = arith.select %8, %76, %75 : vector<8x256xi1>, vector<8x256xf32>
    %78 = arith.select %10, %75, %76 : vector<8x256xi1>, vector<8x256xf32>
    %c1_i32_28 = arith.constant 1 : i32
    %79 = tpu.dynamic_rotate %70 by %c1_i32_28 dim 1 : vector<8x256xf32>, i32 -> vector<8x256xf32>
    %c255_i32_29 = arith.constant 255 : i32
    %80 = tpu.dynamic_rotate %70 by %c255_i32_29 dim 1 : vector<8x256xf32>, i32 -> vector<8x256xf32>
    %81 = arith.select %8, %80, %79 : vector<8x256xi1>, vector<8x256xf32>
    %82 = arith.select %10, %79, %80 : vector<8x256xi1>, vector<8x256xf32>
    %83 = tpu.concatenate %73, %69, %74, %77, %66, %78, %81, %70, %82 in 0 : vector<8x256xf32>, vector<8x256xf32>, vector<8x256xf32>, vector<8x256xf32>, vector<8x256xf32>, vector<8x256xf32>, vector<8x256xf32>, vector<8x256xf32>, vector<8x256xf32> -> vector<72x256xf32>
    %cst_30 = arith.constant dense<0.000000e+00> : vector<8x256xf32>
    %84 = tpu.matmul %12, %83, %cst_30 {dimension_numbers = #tpu.dot_dimension_numbers<[1], [0], [0], [1], [0, 0, 1, 1], [], []>} : vector<8x72xf32>, vector<72x256xf32>, vector<8x256xf32> -> vector<8x256xf32>
    %85 = vector.broadcast %17 : vector<8x1xf32> to vector<8x256xf32>
    %86 = arith.addf %84, %85 : vector<8x256xf32>
    %cst_31 = arith.constant dense<0.000000e+00> : vector<8xf32>
    %87 = vector.multi_reduction <add>, %86, %cst_31 [1] : vector<8x256xf32> to vector<8xf32>
    %88 = vector.shape_cast %87 : vector<8xf32> to vector<8x1xf32>
    %cst_32 = arith.constant 3.906250e-03 : f32
    %89 = vector.broadcast %cst_32 : f32 to vector<8x1xf32>
    %90 = arith.mulf %88, %89 : vector<8x1xf32>
    %91 = arith.mulf %86, %86 : vector<8x256xf32>
    %cst_33 = arith.constant dense<0.000000e+00> : vector<8xf32>
    %92 = vector.multi_reduction <add>, %91, %cst_33 [1] : vector<8x256xf32> to vector<8xf32>
    %93 = vector.shape_cast %92 : vector<8xf32> to vector<8x1xf32>
    %cst_34 = arith.constant 3.906250e-03 : f32
    %94 = vector.broadcast %cst_34 : f32 to vector<8x1xf32>
    %95 = arith.mulf %93, %94 : vector<8x1xf32>
    %96 = arith.mulf %90, %90 : vector<8x1xf32>
    %97 = arith.subf %95, %96 : vector<8x1xf32>
    %cst_35 = arith.constant 0.000000e+00 : f32
    %98 = vector.broadcast %cst_35 : f32 to vector<8x1xf32>
    %99 = arith.maximumf %97, %98 : vector<8x1xf32>
    %cst_36 = arith.constant 9.99999974E-6 : f32
    %100 = vector.broadcast %cst_36 : f32 to vector<8x1xf32>
    %101 = arith.addf %99, %100 : vector<8x1xf32>
    %102 = math.rsqrt %101 : vector<8x1xf32>
    %103 = arith.mulf %18, %102 : vector<8x1xf32>
    %104 = arith.mulf %90, %103 : vector<8x1xf32>
    %105 = arith.subf %19, %104 : vector<8x1xf32>
    %106 = vector.broadcast %103 : vector<8x1xf32> to vector<8x256xf32>
    %107 = arith.mulf %86, %106 : vector<8x256xf32>
    %108 = vector.broadcast %105 : vector<8x1xf32> to vector<8x256xf32>
    %109 = arith.addf %107, %108 : vector<8x256xf32>
    %110 = arith.addf %21, %109 : vector<8x256xf32>
    %c0_37 = arith.constant 0 : index
    %c0_38 = arith.constant 0 : index
    %c0_39 = arith.constant 0 : index
    %111 = vector.load %arg5[%c0_37, %c0_38, %c0_39] : memref<2x8x256xf32, #tpu.memory_space<vmem>>, vector<1x8x256xf32>
    %112 = vector.shape_cast %111 : vector<1x8x256xf32> to vector<8x256xf32>
    %113 = vector.shape_cast %110 : vector<8x256xf32> to vector<1x8x256xf32>
    tpu.vector_store %arg5[%c0_37, %c0_38, %c0_39], %113 {strides = array<i32>} : memref<2x8x256xf32, #tpu.memory_space<vmem>>, vector<1x8x256xf32>,
    %c1 = arith.constant 1 : index
    %c0_40 = arith.constant 0 : index
    %c0_41 = arith.constant 0 : index
    %114 = vector.load %arg1[%c1, %c0_40, %c0_41] : memref<2x8x256xf32, #tpu.memory_space<vmem>>, vector<1x8x256xf32>
    %115 = vector.shape_cast %114 : vector<1x8x256xf32> to vector<8x256xf32>
    %c240_i32_42 = arith.constant 240 : i32
    %116 = tpu.dynamic_rotate %115 by %c240_i32_42 dim 1 : vector<8x256xf32>, i32 -> vector<8x256xf32>
    %c16_i32_43 = arith.constant 16 : i32
    %117 = tpu.dynamic_rotate %115 by %c16_i32_43 dim 1 : vector<8x256xf32>, i32 -> vector<8x256xf32>
    %118 = arith.select %4, %116, %117 : vector<8x256xi1>, vector<8x256xf32>
    %119 = arith.select %6, %117, %116 : vector<8x256xi1>, vector<8x256xf32>
    %c1_i32_44 = arith.constant 1 : i32
    %120 = tpu.dynamic_rotate %118 by %c1_i32_44 dim 1 : vector<8x256xf32>, i32 -> vector<8x256xf32>
    %c255_i32_45 = arith.constant 255 : i32
    %121 = tpu.dynamic_rotate %118 by %c255_i32_45 dim 1 : vector<8x256xf32>, i32 -> vector<8x256xf32>
    %122 = arith.select %8, %121, %120 : vector<8x256xi1>, vector<8x256xf32>
    %123 = arith.select %10, %120, %121 : vector<8x256xi1>, vector<8x256xf32>
    %c1_i32_46 = arith.constant 1 : i32
    %124 = tpu.dynamic_rotate %115 by %c1_i32_46 dim 1 : vector<8x256xf32>, i32 -> vector<8x256xf32>
    %c255_i32_47 = arith.constant 255 : i32
    %125 = tpu.dynamic_rotate %115 by %c255_i32_47 dim 1 : vector<8x256xf32>, i32 -> vector<8x256xf32>
    %126 = arith.select %8, %125, %124 : vector<8x256xi1>, vector<8x256xf32>
    %127 = arith.select %10, %124, %125 : vector<8x256xi1>, vector<8x256xf32>
    %c1_i32_48 = arith.constant 1 : i32
    %128 = tpu.dynamic_rotate %119 by %c1_i32_48 dim 1 : vector<8x256xf32>, i32 -> vector<8x256xf32>
    %c255_i32_49 = arith.constant 255 : i32
    %129 = tpu.dynamic_rotate %119 by %c255_i32_49 dim 1 : vector<8x256xf32>, i32 -> vector<8x256xf32>
    %130 = arith.select %8, %129, %128 : vector<8x256xi1>, vector<8x256xf32>
    %131 = arith.select %10, %128, %129 : vector<8x256xi1>, vector<8x256xf32>
    %132 = tpu.concatenate %122, %118, %123, %126, %115, %127, %130, %119, %131 in 0 : vector<8x256xf32>, vector<8x256xf32>, vector<8x256xf32>, vector<8x256xf32>, vector<8x256xf32>, vector<8x256xf32>, vector<8x256xf32>, vector<8x256xf32>, vector<8x256xf32> -> vector<72x256xf32>
    %cst_50 = arith.constant dense<0.000000e+00> : vector<8x256xf32>
    %133 = tpu.matmul %11, %132, %cst_50 {dimension_numbers = #tpu.dot_dimension_numbers<[1], [0], [0], [1], [0, 0, 1, 1], [], []>} : vector<8x72xf32>, vector<72x256xf32>, vector<8x256xf32> -> vector<8x256xf32>
    %134 = vector.broadcast %14 : vector<8x1xf32> to vector<8x256xf32>
    %135 = arith.addf %133, %134 : vector<8x256xf32>
    %cst_51 = arith.constant dense<0.000000e+00> : vector<8xf32>
    %136 = vector.multi_reduction <add>, %135, %cst_51 [1] : vector<8x256xf32> to vector<8xf32>
    %137 = vector.shape_cast %136 : vector<8xf32> to vector<8x1xf32>
    %cst_52 = arith.constant 3.906250e-03 : f32
    %138 = vector.broadcast %cst_52 : f32 to vector<8x1xf32>
    %139 = arith.mulf %137, %138 : vector<8x1xf32>
    %140 = arith.mulf %135, %135 : vector<8x256xf32>
    %cst_53 = arith.constant dense<0.000000e+00> : vector<8xf32>
    %141 = vector.multi_reduction <add>, %140, %cst_53 [1] : vector<8x256xf32> to vector<8xf32>
    %142 = vector.shape_cast %141 : vector<8xf32> to vector<8x1xf32>
    %cst_54 = arith.constant 3.906250e-03 : f32
    %143 = vector.broadcast %cst_54 : f32 to vector<8x1xf32>
    %144 = arith.mulf %142, %143 : vector<8x1xf32>
    %145 = arith.mulf %139, %139 : vector<8x1xf32>
    %146 = arith.subf %144, %145 : vector<8x1xf32>
    %cst_55 = arith.constant 0.000000e+00 : f32
    %147 = vector.broadcast %cst_55 : f32 to vector<8x1xf32>
    %148 = arith.maximumf %146, %147 : vector<8x1xf32>
    %cst_56 = arith.constant 9.99999974E-6 : f32
    %149 = vector.broadcast %cst_56 : f32 to vector<8x1xf32>
    %150 = arith.addf %148, %149 : vector<8x1xf32>
    %151 = math.rsqrt %150 : vector<8x1xf32>
    %152 = arith.mulf %15, %151 : vector<8x1xf32>
    %153 = arith.mulf %139, %152 : vector<8x1xf32>
    %154 = arith.subf %16, %153 : vector<8x1xf32>
    %155 = vector.broadcast %152 : vector<8x1xf32> to vector<8x256xf32>
    %156 = arith.mulf %135, %155 : vector<8x256xf32>
    %157 = vector.broadcast %154 : vector<8x1xf32> to vector<8x256xf32>
    %158 = arith.addf %156, %157 : vector<8x256xf32>
    %cst_57 = arith.constant 0.000000e+00 : f32
    %159 = vector.broadcast %cst_57 : f32 to vector<8x256xf32>
    %160 = arith.maximumf %158, %159 : vector<8x256xf32>
    %c240_i32_58 = arith.constant 240 : i32
    %161 = tpu.dynamic_rotate %160 by %c240_i32_58 dim 1 : vector<8x256xf32>, i32 -> vector<8x256xf32>
    %c16_i32_59 = arith.constant 16 : i32
    %162 = tpu.dynamic_rotate %160 by %c16_i32_59 dim 1 : vector<8x256xf32>, i32 -> vector<8x256xf32>
    %163 = arith.select %4, %161, %162 : vector<8x256xi1>, vector<8x256xf32>
    %164 = arith.select %6, %162, %161 : vector<8x256xi1>, vector<8x256xf32>
    %c1_i32_60 = arith.constant 1 : i32
    %165 = tpu.dynamic_rotate %163 by %c1_i32_60 dim 1 : vector<8x256xf32>, i32 -> vector<8x256xf32>
    %c255_i32_61 = arith.constant 255 : i32
    %166 = tpu.dynamic_rotate %163 by %c255_i32_61 dim 1 : vector<8x256xf32>, i32 -> vector<8x256xf32>
    %167 = arith.select %8, %166, %165 : vector<8x256xi1>, vector<8x256xf32>
    %168 = arith.select %10, %165, %166 : vector<8x256xi1>, vector<8x256xf32>
    %c1_i32_62 = arith.constant 1 : i32
    %169 = tpu.dynamic_rotate %160 by %c1_i32_62 dim 1 : vector<8x256xf32>, i32 -> vector<8x256xf32>
    %c255_i32_63 = arith.constant 255 : i32
    %170 = tpu.dynamic_rotate %160 by %c255_i32_63 dim 1 : vector<8x256xf32>, i32 -> vector<8x256xf32>
    %171 = arith.select %8, %170, %169 : vector<8x256xi1>, vector<8x256xf32>
    %172 = arith.select %10, %169, %170 : vector<8x256xi1>, vector<8x256xf32>
    %c1_i32_64 = arith.constant 1 : i32
    %173 = tpu.dynamic_rotate %164 by %c1_i32_64 dim 1 : vector<8x256xf32>, i32 -> vector<8x256xf32>
    %c255_i32_65 = arith.constant 255 : i32
    %174 = tpu.dynamic_rotate %164 by %c255_i32_65 dim 1 : vector<8x256xf32>, i32 -> vector<8x256xf32>
    %175 = arith.select %8, %174, %173 : vector<8x256xi1>, vector<8x256xf32>
    %176 = arith.select %10, %173, %174 : vector<8x256xi1>, vector<8x256xf32>
    %177 = tpu.concatenate %167, %163, %168, %171, %160, %172, %175, %164, %176 in 0 : vector<8x256xf32>, vector<8x256xf32>, vector<8x256xf32>, vector<8x256xf32>, vector<8x256xf32>, vector<8x256xf32>, vector<8x256xf32>, vector<8x256xf32>, vector<8x256xf32> -> vector<72x256xf32>
    %cst_66 = arith.constant dense<0.000000e+00> : vector<8x256xf32>
    %178 = tpu.matmul %12, %177, %cst_66 {dimension_numbers = #tpu.dot_dimension_numbers<[1], [0], [0], [1], [0, 0, 1, 1], [], []>} : vector<8x72xf32>, vector<72x256xf32>, vector<8x256xf32> -> vector<8x256xf32>
    %179 = vector.broadcast %17 : vector<8x1xf32> to vector<8x256xf32>
    %180 = arith.addf %178, %179 : vector<8x256xf32>
    %cst_67 = arith.constant dense<0.000000e+00> : vector<8xf32>
    %181 = vector.multi_reduction <add>, %180, %cst_67 [1] : vector<8x256xf32> to vector<8xf32>
    %182 = vector.shape_cast %181 : vector<8xf32> to vector<8x1xf32>
    %cst_68 = arith.constant 3.906250e-03 : f32
    %183 = vector.broadcast %cst_68 : f32 to vector<8x1xf32>
    %184 = arith.mulf %182, %183 : vector<8x1xf32>
    %185 = arith.mulf %180, %180 : vector<8x256xf32>
    %cst_69 = arith.constant dense<0.000000e+00> : vector<8xf32>
    %186 = vector.multi_reduction <add>, %185, %cst_69 [1] : vector<8x256xf32> to vector<8xf32>
    %187 = vector.shape_cast %186 : vector<8xf32> to vector<8x1xf32>
    %cst_70 = arith.constant 3.906250e-03 : f32
    %188 = vector.broadcast %cst_70 : f32 to vector<8x1xf32>
    %189 = arith.mulf %187, %188 : vector<8x1xf32>
    %190 = arith.mulf %184, %184 : vector<8x1xf32>
    %191 = arith.subf %189, %190 : vector<8x1xf32>
    %cst_71 = arith.constant 0.000000e+00 : f32
    %192 = vector.broadcast %cst_71 : f32 to vector<8x1xf32>
    %193 = arith.maximumf %191, %192 : vector<8x1xf32>
    %cst_72 = arith.constant 9.99999974E-6 : f32
    %194 = vector.broadcast %cst_72 : f32 to vector<8x1xf32>
    %195 = arith.addf %193, %194 : vector<8x1xf32>
    %196 = math.rsqrt %195 : vector<8x1xf32>
    %197 = arith.mulf %18, %196 : vector<8x1xf32>
    %198 = arith.mulf %184, %197 : vector<8x1xf32>
    %199 = arith.subf %19, %198 : vector<8x1xf32>
    %200 = vector.broadcast %197 : vector<8x1xf32> to vector<8x256xf32>
    %201 = arith.mulf %180, %200 : vector<8x256xf32>
    %202 = vector.broadcast %199 : vector<8x1xf32> to vector<8x256xf32>
    %203 = arith.addf %201, %202 : vector<8x256xf32>
    %204 = arith.addf %115, %203 : vector<8x256xf32>
    %c1_73 = arith.constant 1 : index
    %c0_74 = arith.constant 0 : index
    %c0_75 = arith.constant 0 : index
    %205 = vector.load %arg5[%c1_73, %c0_74, %c0_75] : memref<2x8x256xf32, #tpu.memory_space<vmem>>, vector<1x8x256xf32>
    %206 = vector.shape_cast %205 : vector<1x8x256xf32> to vector<8x256xf32>
    %207 = vector.shape_cast %204 : vector<8x256xf32> to vector<1x8x256xf32>
    tpu.vector_store %arg5[%c1_73, %c0_74, %c0_75], %207 {strides = array<i32>} : memref<2x8x256xf32, #tpu.memory_space<vmem>>, vector<1x8x256xf32>,
    return
  }
  func.func @transform_0(%arg0: i32) -> (i32, i32, i32) {
    %c0_i32 = arith.constant 0 : i32
    %c0_i32_0 = arith.constant 0 : i32
    %c0_i32_1 = arith.constant 0 : i32
    return %arg0, %c0_i32, %c0_i32_0 : i32, i32, i32
  }
  func.func @transform_1(%arg0: i32) -> (i32, i32) {
    %c0_i32 = arith.constant 0 : i32
    %c0_i32_0 = arith.constant 0 : i32
    %c0_i32_1 = arith.constant 0 : i32
    return %c0_i32, %c0_i32_0 : i32, i32
  }
  func.func @transform_2(%arg0: i32) -> (i32, i32) {
    %c0_i32 = arith.constant 0 : i32
    %c0_i32_0 = arith.constant 0 : i32
    %c0_i32_1 = arith.constant 0 : i32
    return %c0_i32, %c0_i32_0 : i32, i32
  }
  func.func @transform_3(%arg0: i32) -> (i32, i32) {
    %c0_i32 = arith.constant 0 : i32
    %c0_i32_0 = arith.constant 0 : i32
    %c0_i32_1 = arith.constant 0 : i32
    return %c0_i32, %c0_i32_0 : i32, i32
  }
  func.func @transform_4(%arg0: i32) -> (i32, i32, i32) {
    %c0_i32 = arith.constant 0 : i32
    %c0_i32_0 = arith.constant 0 : i32
    %c0_i32_1 = arith.constant 0 : i32
    return %arg0, %c0_i32, %c0_i32_0 : i32, i32, i32
  }
}

</mosaic_0001>

<bundles_post_ra>
// kernel: tpu_custom_call.1
= control target key start
LH: loop header
LB: loop body
LE: loop exit
PB: predicated region body
PF: predicated region fallthrough
CT: control target
= control target key end

     0   :  { %9 = vsyncpa [#allocation3], 0  ;;  %s1990_s0 = inlined_call_operand.hbm [shape: f32[4,8,256], index: 0, kind: input, shape index: {}, may-alias: {0,4}]   ;;  %s1991_s1 = inlined_call_operand.vmem [shape: f32[8,72], index: 1, kind: input, shape index: {}]   ;;  %s1992_s2 = inlined_call_operand.vmem [shape: f32[8,72], index: 2, kind: input, shape index: {}]   ;;  %s1993_s3 = inlined_call_operand.vmem [shape: f32[8,8], index: 3, kind: input, shape index: {}]   ;;  %s1994_s4 = inlined_call_operand.hbm [shape: f32[4,8,256], index: 4, kind: output, shape index: {}, may-alias: {0,4}]  }
   0x1   :  { %11 = vsyncpa [#allocation3 + $0x1], 0 }
   0x2   :  { %12 = vsyncpa [#allocation4], 0 }
   0x3   :  { %14 = vsyncpa [#allocation4 + $0x1], 0  ;;  %s1369_s15 = smov 0   ;;  %s1371_s16 = smov 0  }
   0x4   :  { %s1373_s17 = smov 0   ;;  %s1375_s18 = smov 0  }
   0x5 LB: > { %s1390_s19 = sadd.s32 4294967295, %s1329_s18   ;;  %s960_s20 = sadd.s32 4294967294, %s1329_s18   ;;  %s1329_s18 = sphi %s1375_s18, %s2012_s18   ;;  %s1325_s17 = sphi %s1373_s17, %s2011_s17   ;;  %s1321_s16 = sphi %s1371_s16, %s2010_s16   ;;  %s1317_s15 = sphi %s1369_s15, %s2009_s15  }
   0x6   : > { %s1394_s21 = sadd.s32 1, %s1329_s18   ;;  %s27_s22 = sadd.s32 1, %s1325_s17 }
   0x7   : > { %s24_s23 = ssub.s32 %s1329_s18, %s1394_s21  ;;  %p34_p0 = scmp.ne.s32.totalorder %s1325_s17, %s1321_s16 }
   0x8   : > { %p25_p1 = scmp.eq.s32.totalorder %s24_s23, 0  ;;  %p35_p2 = scmp.eq.s32.totalorder %s1329_s18, 0 }
   0x9   : > { %p40_p3 = scmp.ne.s32.totalorder %s1321_s16, %s1317_s15  ;;  %p41_p4 = scmp.eq.s32.totalorder %s1390_s19, 0 }
   0xa   : > { %s1406_s24 = scalar_select %p25_p1, %s1325_s17, %s27_s22  }
   0xb   : > { %p1408_p5 = por %p35_p2, %p34_p0  ;;  %p1412_p6 = por %p41_p4, %p40_p3 }
   0xc   : > { %p127_p7 = scmp.eq.s32.totalorder %s1390_s19, 1  ;;  %p133_p8 = scmp.eq.s32.totalorder %s960_s20, 1 }
   0xd   : > { %p1004_p10 = scmp.lt.s32.totalorder %s1329_s18, 2  ;;  %s162_s29 = sand.u32 1, %s1325_s17  }
   0xe   : > { %p1419_p11 = por %p127_p7, %p34_p0  ;;  %p1423_p12 = por %p133_p8, %p40_p3 }
   0xf   : > { %s989_s30 = sshll.u32 %s1329_s18, 5  ;;  %s963_s5 = sshll.u32 %s162_s29, 5 }
  0x10   : > { %s172_s8 = scalar_lea.hbm %s1990_s0, %s989_s30  ;;  %s166_s10 = scalar_lea.vmem [#allocation2], %s963_s5 }
  0x11   : > { %s173_s9 = sshll.u32 %s172_s8, 4  ;;  %s175_s11 = sshll.u32 %s166_s10, 4  ;;  %s174_s9 = int_to_ptr.hbm [resolvable:$true] %s173_s9  ;;  %s176_s11 = int_to_ptr.vmem [resolvable:$true] %s175_s11 }
  0x12   : > { %p1434_p13 = pnand %p1004_p10, %p1408_p5  ;;  %p967_p0 = scmp.ge.s32.totalorder %s1329_s18, 1 }
  0x13   : > { %p183_p1 = scmp.lt.s32.totalorder %s1329_s18, 3  ;;  %s163_s13 = scalar_lea.sflag [#allocation3], %s162_s29 }
  0x14   : > { %s1233_s14 = sshra.s32 %s174_s9, 4  ;;  %p1237_p3 = pneg %p1434_p13  ;;  %s1234_s14 = int_to_ptr.hbm [resolvable:$true] %s1233_s14 }
  0x15   : > { %s1235_s20 = scalar_lea.hbm %s1234_s14, 32  ;;  %s1240_s25 = scalar_lea.hbm %s1990_s0, 64 }
  0x16   : > { %p1236_p2 = scmp.ne.s32.totalorder %s1234_s14, %s1235_s20  ;;  %p1241_p5 = scmp.lt.s32.totalorder %s1234_s14, %s1990_s0 }
  0x17   : > { %p1242_p8 = scmp.lt.s32.totalorder %s1240_s25, %s1235_s20 }
  0x18   : > { %p1238_p4 = pnand %p1237_p3, %p1236_p2 }
  0x19   : > { %p1243_p10 = por %p1242_p8, %p1241_p5 }
  0x1a   : > { %p1239_p7 = pneg %p1238_p4 }
  0x1c   : > { %p1244_p9 = pnand %p1243_p10, %p1239_p7 }
  0x1e   : > { %1247 = shalt.err (!%p1244_p9)
}
  0x1f   : > { %s1331_s29 = smov 256   ;;  %s1332_s6 = smov 16  }
  0x20   : > { %999 = dma.hbm_to_vmem [thread:$0]  (!%p1434_p13), %s174_s9, 512, %s176_s11, %s163_s13, %s1331_s29, %s1331_s29, %s1332_s6  }
  0x21   : > { %p184_p2 = pnand %p967_p0, %p183_p1 }
  0x22   : > { %s1455_s7 = sand.u32 (!%p184_p2), 1, %s1321_s16  }
  0x23   : > { %187 = sbr.rel (%p184_p2) target bundleno = 1604 (0x644), region = 36  ;;  %s968_s8 = sshll.u32 (!%p184_p2), %s1455_s7, 5 }
  0x24   : > { %s190_s10 = scalar_lea.sflag (!%p184_p2), [#allocation3], %s1455_s7  ;;  %s1461_s14 = scalar_lea.vmem (!%p184_p2), [#allocation2], %s968_s8 }
  0x28   : > { %1308 = dma.done.wait (%p1412_p6), %s190_s10, 512  }
  0x29   : > { %1310 = vsyncadd (%p1412_p6), %s190_s10, 4294966784  ;;  %v1468_v0 = vld [vmem:[%s1461_s14 + $0x10] sm:$0xff]  ;;  %v1471_v1 = vld [vmem:[%s1461_s14 + $0x18] sm:$0xff]  ;;  %s1333_s26 = smov 112   ;;  %s1334_s9 = smov 16   ;;  %v221_v6 = vlaneseq  ;;  %v1337_v61 = vmov 0  }
  0x2a   : > { %v1474_v2 = vld [vmem:[%s1461_s14] sm:$0xff]  ;;  %v1061_v3 = vpack.i.bf16 %v1471_v1, %v1468_v0  ;;  %v1479_v4 = vld [vmem:[%s1461_s14 + $0x8] sm:$0xff]  ;;  %s1335_s11 = smov 127   ;;  %s1336_s12 = smov 1   ;;  %1131 = vset.pattern.permute.xlu1 %v1337_v61  ;;  %vm311_vm9 = vcmask 588800  }
  0x2b   : > { %v1051_v5 = vpack.i.bf16 %v1479_v4, %v1474_v2  ;;  %v1489_v9 = vand.u32 127, %v221_v6  ;;  %v1595_v6 = vld [vmem:[%s1993_s3] sm:$0xff]  ;;  %s218_s5 = scalar_lea.vmem [#allocation5], %s968_s8  ;;  %s991_s29 = sshll.u32 %s1390_s19, 5 }
  0x2c   : > { %1062 = vrot.lane.b32.xlu1 %v1061_v3, %s1333_s26  ;;  %s871_s19 = scalar_lea.sflag [#allocation4], %s1455_s7  ;;  %s1283_s23 = scalar_lea.hbm %s1994_s4, 64 }
  0x2d   : > { %1052 = vrot.lane.b32.xlu0 %v1051_v5, %s1333_s26  ;;  %v1492_v10 = vadd.s32 128, %v1489_v9  ;;  %vm243_vm0 = vcmp.lt.s32.totalorder %v1489_v9, 112  ;;  %vm226_vm1 = vcmp.lt.s32.totalorder %v1489_v9, 16  ;;  %v224_v39 = vand.u32 15, %v1489_v9 }
  0x2e   : > { %vm260_vm3 = vcmp.lt.s32.totalorder %v1489_v9, 1  ;;  %vm267_vm4 = vcmp.lt.s32.totalorder %v1489_v9, 127 }
  0x2f   : > { %vm229_vm2 = vcmp.ge.s32.totalorder %v1492_v10, 240  ;;  %v225_v38 = vand.u32 15, %v1492_v10  ;;  %vm1560_vm6 = vcmp.eq.s32.totalorder %v224_v39, 15  ;;  %vm1582_vm8 = vcmp.eq.s32.totalorder %v224_v39, 0 }
  0x31   : > { %vm1556_vm5 = vcmp.eq.s32.totalorder %v225_v38, 15  ;;  %vm1572_vm7 = vcmp.eq.s32.totalorder %v225_v38, 0  ;;  %v234_v38 = vld [vmem:[%s1991_s1] sm:$0xff] }
  0x34   : > { %1067 = vrot.lane.b32.xlu1 %v1061_v3, %s1334_s9 }
  0x35   : > { %1057 = vrot.lane.b32.xlu0 %v1051_v5, %s1334_s9 }
  0x3c   : > { %1077 = vrot.lane.b32.xlu1 %v1051_v5, %s1335_s11 }
  0x3d   : > { %1072 = vrot.lane.b32.xlu0 %v1051_v5, %s1336_s12 }
  0x9e   : > { %v1063_v7 = vpop.permute.xlu1 %1062 }
  0x9f   : > { %v1053_v8 = vpop.permute.xlu0 %1052  ;;  %v1065_v11 = vunpack.i.h.bf16 %v1063_v7  ;;  %v1064_v12 = vunpack.i.l.bf16 %v1063_v7 }
  0xa0   : > { %v1055_v13 = vunpack.i.h.bf16 %v1053_v8  ;;  %v1054_v14 = vunpack.i.l.bf16 %v1053_v8 }
  0xa1   : > { %v1499_v21 = vsel %vm243_vm0, %v1064_v12, %v1065_v11  ;;  %v570_v22 = vsel %vm243_vm0, %v1065_v11, %v1064_v12 }
  0xa2   : > { %v244_v24 = vsel %vm243_vm0, %v1054_v14, %v1055_v13  ;;  %v245_v28 = vsel %vm243_vm0, %v1055_v13, %v1054_v14 }
  0xa6   : > { %v1068_v15 = vpop.permute.xlu1 %1067 }
  0xa7   : > { %v1070_v16 = vunpack.i.h.bf16 %v1068_v15  ;;  %v1069_v17 = vunpack.i.l.bf16 %v1068_v15  ;;  %v1058_v18 = vpop.permute.xlu0 %1057 }
  0xa8   : > { %v1060_v19 = vunpack.i.h.bf16 %v1058_v18  ;;  %v1059_v20 = vunpack.i.l.bf16 %v1058_v18 }
  0xa9   : > { %v1505_v23 = vsel %vm226_vm1, %v1069_v17, %v1070_v16  ;;  %v576_v34 = vsel %vm226_vm1, %v1070_v16, %v1069_v17 }
  0xaa   : > { %v1511_v25 = vsel %vm226_vm1, %v1059_v20, %v1060_v19  ;;  %v251_v26 = vsel %vm226_vm1, %v1060_v19, %v1059_v20  ;;  %v1518_v27 = vsel %vm229_vm2, %v1505_v23, %v570_v22  ;;  %v1544_v35 = vsel %vm226_vm1, %v1499_v21, %v576_v34 }
  0xab   : > { %v1096_v29 = vpack.i.bf16 %v1518_v27, %v1499_v21  ;;  %v255_v30 = vsel %vm229_vm2, %v1511_v25, %v245_v28  ;;  %v1529_v31 = vsel %vm226_vm1, %v244_v24, %v251_v26  ;;  %v1126_v36 = vpack.i.bf16 %v1505_v23, %v1544_v35 }
  0xac   : > { %v1081_v32 = vpack.i.bf16 %v255_v30, %v244_v24  ;;  %v1106_v33 = vpack.i.bf16 %v1511_v25, %v1529_v31 }
  0xad   : > { %1097 = vrot.lane.b32.xlu0 %v1096_v29, %s1335_s11 }
  0xae   : > { %1082 = vrot.lane.b32.xlu2 %v1081_v32, %s1336_s12  ;;  %1107 = vrot.lane.b32.xlu1 %v1106_v33, %s1336_s12  ;;  %v1078_v43 = vpop.permute.xlu1 %1077 }
  0xaf   : > { %v1073_v40 = vpop.permute.xlu0 %1072  ;;  %v1080_v51 = vunpack.i.h.bf16 %v1078_v43  ;;  %v1079_v52 = vunpack.i.l.bf16 %v1078_v43 }
  0xb0   : > { %v1075_v47 = vunpack.i.h.bf16 %v1073_v40  ;;  %v1074_v48 = vunpack.i.l.bf16 %v1073_v40 }
  0xb1   : > { %v284_v63 = vsel %vm267_vm4, %v1079_v52, %v1080_v51  ;;  %v285_v5 = vsel %vm267_vm4, %v1080_v51, %v1079_v52 }
  0xb2   : > { %v279_v60 = vsel %vm260_vm3, %v1075_v47, %v1074_v48 }
  0xb3   : > { %v288_v12 = vsel %vm1560_vm6, %v279_v60, %v284_v63  ;;  %v286_v14 = vsel %vm1582_vm8, %v284_v63, %v279_v60 }
  0xb5   : > { %1102 = vrot.lane.b32.xlu0 %v1061_v3, %s1336_s12 }
  0xb6   : > { %1087 = vrot.lane.b32.xlu2 %v1081_v32, %s1335_s11  ;;  %1112 = vrot.lane.b32.xlu1 %v1061_v3, %s1335_s11  ;;  %v278_v3 = vsel %vm260_vm3, %v1074_v48, %v1075_v47 }
  0xb7   : > { %v289_v13 = vsel %vm1556_vm5, %v278_v3, %v285_v5  ;;  %v287_v15 = vsel %vm1572_vm7, %v285_v5, %v278_v3 }
  0xbd   : > { %1127 = vrot.lane.b32.xlu0 %v1126_v36, %s1335_s11 }
  0xbe   : > { %1092 = vrot.lane.b32.xlu2 %v1096_v29, %s1336_s12  ;;  %308 = vperm.xlu1 %1131, %v1595_v6  }
  0xc6   : > { %1117 = vrot.lane.b32.xlu2 %v1106_v33, %s1335_s11 }
  0xce   : > { %1122 = vrot.lane.b32.xlu2 %v1126_v36, %s1336_s12 }
 0x108   : > { %v1083_v37 = vpop.permute.xlu2 %1082 }
 0x109   : > { %v1085_v41 = vunpack.i.h.bf16 %v1083_v37  ;;  %v1084_v42 = vunpack.i.l.bf16 %v1083_v37 }
 0x10b   : > { %v295_v53 = vsel %vm260_vm3, %v1085_v41, %v1084_v42  ;;  %v294_v55 = vsel %vm260_vm3, %v1084_v42, %v1085_v41 }
 0x110   : > { %v1088_v45 = vpop.permute.xlu2 %1087 }
 0x111   : > { %v1090_v49 = vunpack.i.h.bf16 %v1088_v45  ;;  %v1089_v50 = vunpack.i.l.bf16 %v1088_v45 }
 0x113   : > { %v300_v54 = vsel %vm267_vm4, %v1089_v50, %v1090_v49  ;;  %v301_v56 = vsel %vm267_vm4, %v1090_v49, %v1089_v50 }
 0x114   : > { %v304_v58 = vsel %vm1560_vm6, %v295_v53, %v300_v54  ;;  %v305_v59 = vsel %vm1556_vm5, %v294_v55, %v301_v56  ;;  %v302_v8 = vsel %vm1582_vm8, %v300_v54, %v295_v53  ;;  %v303_v11 = vsel %vm1572_vm7, %v301_v56, %v294_v55 }
 0x115   : > { %322 = vmatpush.msra.mxu0 %v304_v58  ;;  %342 = vmatpush.msra.mxu1 %v305_v59 }
 0x117   : > { %323 = vmatpush.msra.mxu0 %v244_v24  ;;  %343 = vmatpush.msra.mxu1 %v255_v30 }
 0x118   : > { %v1093_v7 = vpop.permute.xlu2 %1092 }
 0x119   : > { %324 = vmatpush.msra.mxu0 %v302_v8  ;;  %344 = vmatpush.msra.mxu1 %v303_v11  ;;  %v1095_v34 = vunpack.i.h.bf16 %v1093_v7  ;;  %v1094_v36 = vunpack.i.l.bf16 %v1093_v7 }
 0x11b   : > { %325 = vmatpush.msra.mxu0 %v288_v12  ;;  %345 = vmatpush.msra.mxu1 %v289_v13  ;;  %v618_v48 = vsel %vm260_vm3, %v1095_v34, %v1094_v36  ;;  %v617_v49 = vsel %vm260_vm3, %v1094_v36, %v1095_v34 }
 0x11d   : > { %326 = vmatpush.msra.mxu0 %v1474_v2  ;;  %346 = vmatpush.msra.mxu1 %v1479_v4 }
 0x11f   : > { %327 = vmatpush.msra.mxu0 %v286_v14  ;;  %347 = vmatpush.msra.mxu1 %v287_v15  ;;  %v1098_v16 = vpop.permute.xlu0 %1097 }
 0x120   : > { %v1118_v17 = vpop.permute.xlu2 %1117  ;;  %v1108_v18 = vpop.permute.xlu1 %1107  ;;  %v1100_v26 = vunpack.i.h.bf16 %v1098_v16  ;;  %v1099_v28 = vunpack.i.l.bf16 %v1098_v16 }
 0x121   : > { %v1120_v19 = vunpack.i.h.bf16 %v1118_v17  ;;  %v1119_v20 = vunpack.i.l.bf16 %v1118_v17  ;;  %v1110_v22 = vunpack.i.h.bf16 %v1108_v18  ;;  %v1109_v24 = vunpack.i.l.bf16 %v1108_v18 }
 0x122   : > { %v623_v39 = vsel %vm267_vm4, %v1099_v28, %v1100_v26  ;;  %v624_v40 = vsel %vm267_vm4, %v1100_v26, %v1099_v28 }
 0x123   : > { %v262_v2 = vsel %vm260_vm3, %v1110_v22, %v1109_v24  ;;  %v268_v4 = vsel %vm267_vm4, %v1119_v20, %v1120_v19  ;;  %v261_v29 = vsel %vm260_vm3, %v1109_v24, %v1110_v22  ;;  %v269_v30 = vsel %vm267_vm4, %v1120_v19, %v1119_v20 }
 0x124   : > { %v272_v32 = vsel %vm1560_vm6, %v262_v2, %v268_v4  ;;  %v273_v33 = vsel %vm1556_vm5, %v261_v29, %v269_v30  ;;  %v627_v50 = vsel %vm1560_vm6, %v618_v48, %v623_v39  ;;  %v628_v51 = vsel %vm1556_vm5, %v617_v49, %v624_v40 }
 0x125   : > { %328 = vmatpush.msra.mxu0 %v272_v32  ;;  %348 = vmatpush.msra.mxu1 %v273_v33  ;;  %v625_v58 = vsel %vm1582_vm8, %v623_v39, %v618_v48  ;;  %v626_v59 = vsel %vm1572_vm7, %v624_v40, %v617_v49 }
 0x127   : > { %329 = vmatpush.msra.mxu0 %v1529_v31  ;;  %349 = vmatpush.msra.mxu1 %v1511_v25  ;;  %v1103_v37 = vpop.permute.xlu0 %1102  ;;  %v270_v31 = vsel %vm1582_vm8, %v268_v4, %v262_v2  ;;  %v271_v25 = vsel %vm1572_vm7, %v269_v30, %v261_v29 }
 0x128   : > { %v1105_v41 = vunpack.i.h.bf16 %v1103_v37  ;;  %v1104_v42 = vunpack.i.l.bf16 %v1103_v37  ;;  %v1113_v43 = vpop.permute.xlu1 %1112  ;;  %v1123_v52 = vpop.permute.xlu2 %1122  ;;  %v1338_v37 = vmov 1  }
 0x129   : > { %v1115_v45 = vunpack.i.h.bf16 %v1113_v43  ;;  %v1114_v47 = vunpack.i.l.bf16 %v1113_v43  ;;  %330 = vmatpush.msra.mxu0 %v270_v31  ;;  %350 = vmatpush.msra.mxu1 %v271_v25  ;;  %v1125_v60 = vunpack.i.h.bf16 %v1123_v52  ;;  %v1124_v61 = vunpack.i.l.bf16 %v1123_v52 }
 0x12a   : > { %970 = vmatmul.msk.f32.vlgmr.msra.gmra.mxu0 %vm311_vm9, %v234_v38  ;;  %971 = vmatmul.msk.f32.vlgmr.msra.gmra.mxu1 %vm311_vm9, %v234_v38  ;;  %v602_v53 = vsel %vm260_vm3, %v1105_v41, %v1104_v42  ;;  %v601_v55 = vsel %vm260_vm3, %v1104_v42, %v1105_v41 }
 0x12b   : > { %636 = vmatpush.msrb.mxu0 %v627_v50  ;;  %656 = vmatpush.msrb.mxu1 %v628_v51  ;;  %v607_v54 = vsel %vm267_vm4, %v1114_v47, %v1115_v45  ;;  %v608_v56 = vsel %vm267_vm4, %v1115_v45, %v1114_v47  ;;  %v586_v11 = vsel %vm260_vm3, %v1125_v60, %v1124_v61 }
 0x12c   : > { %v611_v3 = vsel %vm1560_vm6, %v602_v53, %v607_v54  ;;  %v612_v5 = vsel %vm1556_vm5, %v601_v55, %v608_v56  ;;  %v585_v12 = vsel %vm260_vm3, %v1124_v61, %v1125_v60  ;;  %v609_v13 = vsel %vm1582_vm8, %v607_v54, %v602_v53  ;;  %1132 = vset.pattern.permute.xlu1 %v1338_v37 }
 0x12d   : > { %637 = vmatpush.msrb.mxu0 %v1499_v21  ;;  %657 = vmatpush.msrb.mxu1 %v1518_v27  ;;  %v610_v14 = vsel %vm1572_vm7, %v608_v56, %v601_v55 }
 0x12e   : > { %1134 = vset.pattern.permute.xlu2 %v1338_v37 }
 0x12f   : > { %638 = vmatpush.msrb.mxu0 %v625_v58  ;;  %658 = vmatpush.msrb.mxu1 %v626_v59  ;;  %v1128_v21 = vpop.permute.xlu0 %1127 }
 0x130   : > { %v1130_v27 = vunpack.i.h.bf16 %v1128_v21  ;;  %v1129_v63 = vunpack.i.l.bf16 %v1128_v21  ;;  %v309_v17 = vpop.permute.xlu1 %308 }
 0x131   : > { %639 = vmatpush.msrb.mxu0 %v611_v3  ;;  %659 = vmatpush.msrb.mxu1 %v612_v5 }
 0x132   : > { %v591_v7 = vsel %vm267_vm4, %v1129_v63, %v1130_v27  ;;  %v592_v8 = vsel %vm267_vm4, %v1130_v27, %v1129_v63 }
 0x133   : > { %640 = vmatpush.msrb.mxu0 %v1468_v0  ;;  %660 = vmatpush.msrb.mxu1 %v1471_v1  ;;  %v595_v15 = vsel %vm1560_vm6, %v586_v11, %v591_v7  ;;  %v596_v0 = vsel %vm1556_vm5, %v585_v12, %v592_v8  ;;  %v593_v1 = vsel %vm1582_vm8, %v591_v7, %v586_v11 }
 0x134   : > { %v594_v16 = vsel %vm1572_vm7, %v592_v8, %v585_v12 }
 0x135   : > { %641 = vmatpush.msrb.mxu0 %v609_v13  ;;  %661 = vmatpush.msrb.mxu1 %v610_v14  ;;  %v1339_v14 = vmov 2  }
 0x136   : > { %1133 = vset.pattern.permute.xlu0 %v1339_v14 }
 0x137   : > { %642 = vmatpush.msrb.mxu0 %v595_v15  ;;  %662 = vmatpush.msrb.mxu1 %v596_v0 }
 0x139   : > { %643 = vmatpush.msrb.mxu0 %v1544_v35  ;;  %663 = vmatpush.msrb.mxu1 %v1505_v23 }
 0x13b   : > { %644 = vmatpush.msrb.mxu0 %v593_v1  ;;  %664 = vmatpush.msrb.mxu1 %v594_v16 }
 0x13c   : > { %976 = vmatmul.msk.f32.vlgmr.msrb.gmra.mxu0 %vm311_vm9, %v234_v38  ;;  %977 = vmatmul.msk.f32.vlgmr.msrb.gmra.mxu1 %vm311_vm9, %v234_v38 }
 0x1a7   : > { %v332_v18 = vpop.f32.mrf.mxu0  ;;  %v352_v19 = vpop.f32.mrf.mxu1 }
 0x1a8   : > { %v1691_v20 = vadd.f32 %v332_v18, %v309_v17  ;;  %v1693_v35 = vadd.f32 %v352_v19, %v309_v17 }
 0x1aa   : > { %v355_v23 = vadd.f32 %v1693_v35, %v1691_v20  ;;  %v359_v22 = vmul.f32 %v1691_v20, %v1691_v20  ;;  %v360_v24 = vmul.f32 %v1693_v35, %v1693_v35 }
 0x1ac   : > { %356 = vadd.xlane.f32.xlu2 %v355_v23  ;;  %v361_v26 = vadd.f32 %v360_v24, %v359_v22 }
 0x1ae   : > { %362 = vadd.xlane.f32.xlu0 %v361_v26 }
 0x1b9   : > { %v646_v28 = vpop.f32.mrf.mxu0  ;;  %v666_v2 = vpop.f32.mrf.mxu1 }
 0x1ba   : > { %v1701_v4 = vadd.f32 %v646_v28, %v309_v17  ;;  %v1703_v29 = vadd.f32 %v666_v2, %v309_v17 }
 0x1bc   : > { %v669_v30 = vadd.f32 %v1703_v29, %v1701_v4  ;;  %v673_v32 = vmul.f32 %v1701_v4, %v1701_v4  ;;  %v674_v33 = vmul.f32 %v1703_v29, %v1703_v29 }
 0x1be   : > { %670 = vadd.xlane.f32.xlu1 %v669_v30  ;;  %v675_v34 = vadd.f32 %v674_v33, %v673_v32 }
 0x1c0   : > { %676 = vadd.xlane.f32.xlu2 %v675_v34 }
 0x21f   : > { %v357_v36 = vpop.xlane.xlu2 %356 }
 0x220   : > { %v358_v38 = vmul.f32 0.00390625, %v357_v36 }
 0x221   : > { %v363_v39 = vpop.xlane.xlu0 %362 }
 0x222   : > { %v365_v40 = vmul.f32 %v358_v38, %v358_v38  ;;  %v364_v41 = vmul.f32 0.00390625, %v363_v39 }
 0x224   : > { %v366_v42 = vsub.f32 %v364_v41, %v365_v40 }
 0x226   : > { %v367_v43 = vmax.f32 %v366_v42, 0.0 }
 0x228   : > { %v368_v31 = vadd.f32 1e-05, %v367_v43 }
 0x22a   : > { %1221 = vrsqrt.f32 %v368_v31  ;;  %vm375_vm10 = vweird.f32 %v368_v31 }
 0x230   : > { %v1222_v25 = vpop.eup %1221 }
 0x231   : > { %v370_v45 = vmul.f32 %v1222_v25, %v368_v31  ;;  %v671_v47 = vpop.xlane.xlu1 %670  ;;  %vm376_vm11 = vweird.f32 %v1222_v25 }
 0x232   : > { %v672_v48 = vmul.f32 0.00390625, %v671_v47  ;;  %vm377_vm12 = vmor %vm375_vm10, %vm376_vm11 }
 0x233   : > { %v371_v49 = vmul.f32 %v1222_v25, %v370_v45  ;;  %v677_v50 = vpop.xlane.xlu2 %676 }
 0x234   : > { %v679_v51 = vmul.f32 %v672_v48, %v672_v48  ;;  %v678_v52 = vmul.f32 0.00390625, %v677_v50 }
 0x235   : > { %v372_v53 = vmul.f32 0.5, %v371_v49 }
 0x236   : > { %v680_v54 = vsub.f32 %v678_v52, %v679_v51 }
 0x237   : > { %v373_v55 = vsub.f32 1.5, %v372_v53 }
 0x238   : > { %v681_v56 = vmax.f32 %v680_v54, 0.0 }
 0x239   : > { %v374_v58 = vmul.f32 %v1222_v25, %v373_v55 }
 0x23a   : > { %v682_v59 = vadd.f32 1e-05, %v681_v56 }
 0x23b   : > { %v378_v60 = vsel %vm377_vm12, %v1222_v25, %v374_v58 }
 0x23c   : > { %1223 = vrsqrt.f32 %v682_v59  ;;  %v379_v61 = vmul.f32 %v378_v60, %v1595_v6  ;;  %vm689_vm14 = vweird.f32 %v682_v59 }
 0x23e   : > { %388 = vperm.xlu1 %1132, %v379_v61   ;;  %v380_v21 = vmul.f32 %v379_v61, %v358_v38 }
 0x240   : > { %382 = vrot.lane.b32.xlu2 %v380_v21, %s1336_s12 }
 0x242   : > { %v1224_v27 = vpop.eup %1223 }
 0x243   : > { %v684_v63 = vmul.f32 %v1224_v27, %v682_v59  ;;  %vm690_vm13 = vweird.f32 %v1224_v27 }
 0x244   : > { %vm691_vm15 = vmor %vm689_vm14, %vm690_vm13 }
 0x245   : > { %v685_v3 = vmul.f32 %v1224_v27, %v684_v63 }
 0x246   : > { %1135 = vset.pattern.permute.xlu1 %v1339_v14 }
 0x247   : > { %v686_v5 = vmul.f32 0.5, %v685_v3 }
 0x249   : > { %v687_v7 = vsub.f32 1.5, %v686_v5 }
 0x24b   : > { %v688_v8 = vmul.f32 %v1224_v27, %v687_v7 }
 0x24d   : > { %v692_v11 = vsel %vm691_vm15, %v1224_v27, %v688_v8 }
 0x24e   : > { %v693_v12 = vmul.f32 %v692_v11, %v1595_v6 }
 0x250   : > { %702 = vperm.xlu2 %1134, %v693_v12   ;;  %v694_v13 = vmul.f32 %v693_v12, %v672_v48 }
 0x252   : > { %696 = vrot.lane.b32.xlu0 %v694_v13, %s1336_s12 }
 0x29a   : > { %v383_v15 = vpop.permute.xlu2 %382 }
 0x29b   : > { %v385_v0 = vsub.f32 %v1595_v6, %v383_v15 }
 0x29d   : > { %395 = vperm.xlu0 %1133, %v385_v0  }
 0x2b0   : > { %v389_v17 = vpop.permute.xlu1 %388 }
 0x2b1   : > { %v391_v18 = vmul.f32 %v389_v17, %v1691_v20  ;;  %v392_v19 = vmul.f32 %v389_v17, %v1693_v35  ;;  %v703_v20 = vpop.permute.xlu2 %702 }
 0x2b2   : > { %v705_v35 = vmul.f32 %v703_v20, %v1701_v4  ;;  %v706_v30 = vmul.f32 %v703_v20, %v1703_v29 }
 0x2c4   : > { %v697_v1 = vpop.permute.xlu0 %696 }
 0x2c5   : > { %v699_v16 = vsub.f32 %v1595_v6, %v697_v1 }
 0x2c7   : > { %709 = vperm.xlu1 %1135, %v699_v16  }
 0x30f   : > { %v396_v23 = vpop.permute.xlu0 %395 }
 0x310   : > { %v1719_v22 = vadd.f32 %v396_v23, %v391_v18  ;;  %v1721_v24 = vadd.f32 %v396_v23, %v392_v19 }
 0x312   : > { %v400_v26 = vmax.f32 %v1719_v22, 0.0  ;;  %v401_v28 = vmax.f32 %v1721_v24, 0.0 }
 0x314   : > { %v1141_v2 = vpack.i.bf16 %v401_v28, %v400_v26 }
 0x316   : > { %1142 = vrot.lane.b32.xlu1 %v1141_v2, %s1334_s9  ;;  %1137 = vrot.lane.b32.xlu2 %v1141_v2, %s1333_s26 }
 0x31e   : > { %1162 = vrot.lane.b32.xlu1 %v1141_v2, %s1335_s11 }
 0x339   : > { %v710_v32 = vpop.permute.xlu1 %709 }
 0x33a   : > { %v1734_v33 = vadd.f32 %v710_v32, %v705_v35  ;;  %v1736_v34 = vadd.f32 %v710_v32, %v706_v30 }
 0x33c   : > { %v714_v36 = vmax.f32 %v1734_v33, 0.0  ;;  %v715_v37 = vmax.f32 %v1736_v34, 0.0 }
 0x33e   : > { %v1151_v38 = vpack.i.bf16 %v715_v37, %v714_v36 }
 0x340   : > { %1152 = vrot.lane.b32.xlu2 %v1151_v38, %s1334_s9  ;;  %1147 = vrot.lane.b32.xlu0 %v1151_v38, %s1333_s26  ;;  %s883_s26 = scalar_lea.hbm %s1994_s4, %s991_s29 }
 0x341   : > { %s886_s8 = sshll.u32 %s883_s26, 4  ;;  %s887_s8 = int_to_ptr.hbm [resolvable:$true] %s886_s8 }
 0x348   : > { %1157 = vrot.lane.b32.xlu2 %v1141_v2, %s1336_s12 }
 0x370   : > { %v1138_v4 = vpop.permute.xlu2 %1137 }
 0x371   : > { %v1140_v29 = vunpack.i.h.bf16 %v1138_v4  ;;  %v1139_v39 = vunpack.i.l.bf16 %v1138_v4 }
 0x373   : > { %v407_v43 = vsel %vm243_vm0, %v1140_v29, %v1139_v39  ;;  %v406_v25 = vsel %vm243_vm0, %v1139_v39, %v1140_v29 }
 0x388   : > { %v1143_v40 = vpop.permute.xlu1 %1142 }
 0x389   : > { %v1145_v41 = vunpack.i.h.bf16 %v1143_v40  ;;  %v1144_v42 = vunpack.i.l.bf16 %v1143_v40 }
 0x38b   : > { %v1751_v31 = vsel %vm226_vm1, %v1144_v42, %v1145_v41  ;;  %v413_v48 = vsel %vm226_vm1, %v1145_v41, %v1144_v42 }
 0x38c   : > { %v417_v45 = vsel %vm229_vm2, %v1751_v31, %v407_v43  ;;  %v1764_v49 = vsel %vm226_vm1, %v406_v25, %v413_v48 }
 0x38d   : > { %v1171_v47 = vpack.i.bf16 %v417_v45, %v406_v25  ;;  %v1176_v50 = vpack.i.bf16 %v1751_v31, %v1764_v49 }
 0x38f   : > { %1172 = vrot.lane.b32.xlu0 %v1171_v47, %s1335_s11  ;;  %1167 = vrot.lane.b32.xlu1 %v1171_v47, %s1336_s12 }
 0x390   : > { %v1163_v3 = vpop.permute.xlu1 %1162 }
 0x391   : > { %v1165_v2 = vunpack.i.h.bf16 %v1163_v3  ;;  %v1164_v20 = vunpack.i.l.bf16 %v1163_v3  ;;  %v235_v3 = vld [vmem:[%s1992_s2] sm:$0xff] }
 0x393   : > { %v444_v4 = vsel %vm267_vm4, %v1164_v20, %v1165_v2  ;;  %v445_v29 = vsel %vm267_vm4, %v1165_v2, %v1164_v20 }
 0x397   : > { %1177 = vrot.lane.b32.xlu1 %v1176_v50, %s1336_s12 }
 0x39a   : > { %v1153_v51 = vpop.permute.xlu2 %1152 }
 0x39b   : > { %v1155_v52 = vunpack.i.h.bf16 %v1153_v51  ;;  %v1154_v53 = vunpack.i.l.bf16 %v1153_v51 }
 0x39d   : > { %v1772_v58 = vsel %vm226_vm1, %v1154_v53, %v1155_v52  ;;  %v727_v27 = vsel %vm226_vm1, %v1155_v52, %v1154_v53 }
 0x39f   : > { %1202 = vrot.lane.b32.xlu1 %v1151_v38, %s1335_s11 }
 0x3a2   : > { %v1158_v5 = vpop.permute.xlu2 %1157 }
 0x3a3   : > { %v1160_v15 = vunpack.i.h.bf16 %v1158_v5  ;;  %v1159_v0 = vunpack.i.l.bf16 %v1158_v5 }
 0x3a5   : > { %v439_v35 = vsel %vm260_vm3, %v1160_v15, %v1159_v0  ;;  %v438_v30 = vsel %vm260_vm3, %v1159_v0, %v1160_v15 }
 0x3a6   : > { %v448_v39 = vsel %vm1560_vm6, %v439_v35, %v444_v4  ;;  %v449_v40 = vsel %vm1556_vm5, %v438_v30, %v445_v29  ;;  %v446_v41 = vsel %vm1582_vm8, %v444_v4, %v439_v35  ;;  %v447_v42 = vsel %vm1572_vm7, %v445_v29, %v438_v30 }
 0x3b2   : > { %v1148_v54 = vpop.permute.xlu0 %1147 }
 0x3b3   : > { %v1150_v55 = vunpack.i.h.bf16 %v1148_v54  ;;  %v1149_v56 = vunpack.i.l.bf16 %v1148_v54 }
 0x3b5   : > { %v1776_v59 = vsel %vm243_vm0, %v1149_v56, %v1150_v55  ;;  %v721_v60 = vsel %vm243_vm0, %v1150_v55, %v1149_v56 }
 0x3b6   : > { %v1783_v61 = vsel %vm229_vm2, %v1772_v58, %v721_v60  ;;  %v1796_v10 = vsel %vm226_vm1, %v1776_v59, %v727_v27 }
 0x3b7   : > { %v1191_v21 = vpack.i.bf16 %v1783_v61, %v1776_v59  ;;  %v1211_v63 = vpack.i.bf16 %v1772_v58, %v1796_v10 }
 0x3b9   : > { %1192 = vrot.lane.b32.xlu2 %v1191_v21, %s1335_s11  ;;  %1182 = vrot.lane.b32.xlu0 %v1191_v21, %s1336_s12 }
 0x3c1   : > { %1197 = vrot.lane.b32.xlu2 %v1151_v38, %s1336_s12  ;;  %1187 = vrot.lane.b32.xlu0 %v1176_v50, %s1335_s11 }
 0x3c9   : > { %1212 = vrot.lane.b32.xlu2 %v1211_v63, %s1335_s11  ;;  %1207 = vrot.lane.b32.xlu0 %v1211_v63, %s1336_s12  ;;  %s884_s11 = sshll.u32 %s218_s5, 4  ;;  %s885_s11 = int_to_ptr.vmem [resolvable:$true] %s884_s11 }
 0x401   : > { %v1173_v7 = vpop.permute.xlu0 %1172  ;;  %v1168_v8 = vpop.permute.xlu1 %1167 }
 0x402   : > { %v1175_v11 = vunpack.i.h.bf16 %v1173_v7  ;;  %v1174_v12 = vunpack.i.l.bf16 %v1173_v7  ;;  %v1170_v13 = vunpack.i.h.bf16 %v1168_v8  ;;  %v1169_v14 = vunpack.i.l.bf16 %v1168_v8 }
 0x404   : > { %v455_v1 = vsel %vm260_vm3, %v1170_v13, %v1169_v14  ;;  %v460_v16 = vsel %vm267_vm4, %v1174_v12, %v1175_v11  ;;  %v454_v17 = vsel %vm260_vm3, %v1169_v14, %v1170_v13  ;;  %v461_v18 = vsel %vm267_vm4, %v1175_v11, %v1174_v12 }
 0x405   : > { %v464_v19 = vsel %vm1560_vm6, %v455_v1, %v460_v16  ;;  %v465_v23 = vsel %vm1556_vm5, %v454_v17, %v461_v18  ;;  %v462_v32 = vsel %vm1582_vm8, %v460_v16, %v455_v1  ;;  %v463_v38 = vsel %vm1572_vm7, %v461_v18, %v454_v17 }
 0x406   : > { %480 = vmatpush.msra.mxu2 %v464_v19  ;;  %500 = vmatpush.msra.mxu3 %v465_v23 }
 0x408   : > { %481 = vmatpush.msra.mxu2 %v406_v25  ;;  %501 = vmatpush.msra.mxu3 %v417_v45  ;;  %v1340_v45 = vmov 3  }
 0x409   : > { %1216 = vset.pattern.permute.xlu1 %v1340_v45  ;;  %v1178_v47 = vpop.permute.xlu1 %1177 }
 0x40a   : > { %482 = vmatpush.msra.mxu2 %v462_v32  ;;  %502 = vmatpush.msra.mxu3 %v463_v38  ;;  %v1180_v22 = vunpack.i.h.bf16 %v1178_v47 }
 0x40b   : > { %467 = vperm.xlu1 %1216, %v1595_v6  }
 0x40c   : > { %483 = vmatpush.msra.mxu2 %v448_v39  ;;  %503 = vmatpush.msra.mxu3 %v449_v40 }
 0x40e   : > { %484 = vmatpush.msra.mxu2 %v400_v26  ;;  %504 = vmatpush.msra.mxu3 %v401_v28  ;;  %v1179_v26 = vunpack.i.l.bf16 %v1178_v47 }
 0x410   : > { %485 = vmatpush.msra.mxu2 %v446_v41  ;;  %505 = vmatpush.msra.mxu3 %v447_v42  ;;  %v423_v50 = vsel %vm260_vm3, %v1180_v22, %v1179_v26  ;;  %v422_v51 = vsel %vm260_vm3, %v1179_v26, %v1180_v22 }
 0x411   : > { %v1203_v8 = vpop.permute.xlu1 %1202 }
 0x412   : > { %v1205_v1 = vunpack.i.h.bf16 %v1203_v8  ;;  %v1204_v16 = vunpack.i.l.bf16 %v1203_v8 }
 0x413   : > { %v1193_v25 = vpop.permute.xlu2 %1192 }
 0x414   : > { %v1195_v27 = vunpack.i.h.bf16 %v1193_v25  ;;  %v1194_v63 = vunpack.i.l.bf16 %v1193_v25 }
 0x416   : > { %v775_v14 = vsel %vm267_vm4, %v1195_v27, %v1194_v63 }
 0x41b   : > { %v1198_v56 = vpop.permute.xlu2 %1197 }
 0x41c   : > { %v1199_v13 = vunpack.i.l.bf16 %v1198_v56 }
 0x423   : > { %v1213_v23 = vpop.permute.xlu2 %1212 }
 0x424   : > { %v1215_v4 = vunpack.i.h.bf16 %v1213_v23  ;;  %v1214_v29 = vunpack.i.l.bf16 %v1213_v23 }
 0x426   : > { %v742_v33 = vsel %vm267_vm4, %v1214_v29, %v1215_v4  ;;  %v743_v34 = vsel %vm267_vm4, %v1215_v4, %v1214_v29  ;;  %v1342_v29 = vmov 5  }
 0x427   : > { %1218 = vset.pattern.permute.xlu2 %v1342_v29 }
 0x42b   : > { %v1183_v43 = vpop.permute.xlu0 %1182 }
 0x42c   : > { %v1185_v52 = vunpack.i.h.bf16 %v1183_v43  ;;  %v1184_v53 = vunpack.i.l.bf16 %v1183_v43 }
 0x42e   : > { %v769_v5 = vsel %vm260_vm3, %v1185_v52, %v1184_v53  ;;  %v768_v7 = vsel %vm260_vm3, %v1184_v53, %v1185_v52  ;;  %v1341_v53 = vmov 4  }
 0x42f   : > { %v779_v0 = vsel %vm1556_vm5, %v768_v7, %v775_v14  ;;  %v777_v20 = vsel %vm1572_vm7, %v775_v14, %v768_v7  ;;  %1217 = vset.pattern.permute.xlu0 %v1341_v53  ;;  %1219 = vset.pattern.permute.xlu1 %v1341_v53 }
 0x433   : > { %v1188_v48 = vpop.permute.xlu0 %1187 }
 0x434   : > { %v1190_v24 = vunpack.i.h.bf16 %v1188_v48  ;;  %v1189_v28 = vunpack.i.l.bf16 %v1188_v48 }
 0x436   : > { %v428_v54 = vsel %vm267_vm4, %v1189_v28, %v1190_v24  ;;  %v429_v55 = vsel %vm267_vm4, %v1190_v24, %v1189_v28 }
 0x437   : > { %v432_v60 = vsel %vm1560_vm6, %v423_v50, %v428_v54  ;;  %v433_v21 = vsel %vm1556_vm5, %v422_v51, %v429_v55  ;;  %v430_v11 = vsel %vm1582_vm8, %v428_v54, %v423_v50  ;;  %v431_v12 = vsel %vm1572_vm7, %v429_v55, %v422_v51 }
 0x438   : > { %486 = vmatpush.msra.mxu2 %v432_v60  ;;  %506 = vmatpush.msra.mxu3 %v433_v21 }
 0x43a   : > { %487 = vmatpush.msra.mxu2 %v1764_v49  ;;  %507 = vmatpush.msra.mxu3 %v1751_v31  ;;  %v1200_v49 = vunpack.i.h.bf16 %v1198_v56  ;;  %v774_v31 = vsel %vm267_vm4, %v1194_v63, %v1195_v27 }
 0x43b   : > { %v778_v15 = vsel %vm1560_vm6, %v769_v5, %v774_v31  ;;  %v1208_v17 = vpop.permute.xlu0 %1207  ;;  %v776_v2 = vsel %vm1582_vm8, %v774_v31, %v769_v5 }
 0x43c   : > { %488 = vmatpush.msra.mxu2 %v430_v11  ;;  %508 = vmatpush.msra.mxu3 %v431_v12  ;;  %v753_v18 = vsel %vm260_vm3, %v1200_v49, %v1199_v13  ;;  %v752_v19 = vsel %vm260_vm3, %v1199_v13, %v1200_v49  ;;  %v1210_v35 = vunpack.i.h.bf16 %v1208_v17  ;;  %v1209_v30 = vunpack.i.l.bf16 %v1208_v17 }
 0x43d   : > { %972 = vmatmul.msk.f32.vlgmr.msra.gmra.mxu2 %vm311_vm9, %v235_v3  ;;  %973 = vmatmul.msk.f32.vlgmr.msra.gmra.mxu3 %vm311_vm9, %v235_v3 }
 0x43e   : > { %787 = vmatpush.msrb.mxu2 %v778_v15  ;;  %807 = vmatpush.msrb.mxu3 %v779_v0  ;;  %v737_v39 = vsel %vm260_vm3, %v1210_v35, %v1209_v30  ;;  %v736_v40 = vsel %vm260_vm3, %v1209_v30, %v1210_v35 }
 0x43f   : > { %v744_v43 = vsel %vm1582_vm8, %v742_v33, %v737_v39  ;;  %v745_v25 = vsel %vm1572_vm7, %v743_v34, %v736_v40 }
 0x440   : > { %788 = vmatpush.msrb.mxu2 %v1776_v59  ;;  %808 = vmatpush.msrb.mxu3 %v1783_v61  ;;  %v758_v59 = vsel %vm267_vm4, %v1204_v16, %v1205_v1  ;;  %v759_v61 = vsel %vm267_vm4, %v1205_v1, %v1204_v16 }
 0x441   : > { %v762_v32 = vsel %vm1560_vm6, %v753_v18, %v758_v59  ;;  %v763_v38 = vsel %vm1556_vm5, %v752_v19, %v759_v61  ;;  %v760_v41 = vsel %vm1582_vm8, %v758_v59, %v753_v18  ;;  %v761_v42 = vsel %vm1572_vm7, %v759_v61, %v752_v19 }
 0x442   : > { %789 = vmatpush.msrb.mxu2 %v776_v2  ;;  %809 = vmatpush.msrb.mxu3 %v777_v20 }
 0x444   : > { %790 = vmatpush.msrb.mxu2 %v762_v32  ;;  %810 = vmatpush.msrb.mxu3 %v763_v38 }
 0x446   : > { %791 = vmatpush.msrb.mxu2 %v714_v36  ;;  %811 = vmatpush.msrb.mxu3 %v715_v37  ;;  %v746_v36 = vsel %vm1560_vm6, %v737_v39, %v742_v33  ;;  %v747_v37 = vsel %vm1556_vm5, %v736_v40, %v743_v34 }
 0x448   : > { %792 = vmatpush.msrb.mxu2 %v760_v41  ;;  %812 = vmatpush.msrb.mxu3 %v761_v42 }
 0x44a   : > { %793 = vmatpush.msrb.mxu2 %v746_v36  ;;  %813 = vmatpush.msrb.mxu3 %v747_v37 }
 0x44c   : > { %794 = vmatpush.msrb.mxu2 %v1796_v10  ;;  %814 = vmatpush.msrb.mxu3 %v1772_v58 }
 0x44e   : > { %795 = vmatpush.msrb.mxu2 %v744_v43  ;;  %815 = vmatpush.msrb.mxu3 %v745_v25 }
 0x44f   : > { %978 = vmatmul.msk.f32.vlgmr.msrb.gmra.mxu2 %vm311_vm9, %v235_v3  ;;  %979 = vmatmul.msk.f32.vlgmr.msrb.gmra.mxu3 %vm311_vm9, %v235_v3 }
 0x47d   : > { %v468_v9 = vpop.permute.xlu1 %467 }
 0x4c0   : > { %v490_v44 = vpop.f32.mrf.mxu2  ;;  %v510_v46 = vpop.f32.mrf.mxu3 }
 0x4c1   : > { %v1920_v45 = vadd.f32 %v490_v44, %v468_v9  ;;  %v1922_v10 = vadd.f32 %v510_v46, %v468_v9  ;;  %v1230_v46 = vld [vmem:[%s1461_s14 + $0x8] sm:$0xff] }
 0x4c3   : > { %v513_v62 = vadd.f32 %v1922_v10, %v1920_v45  ;;  %v517_v57 = vmul.f32 %v1920_v45, %v1920_v45  ;;  %v518_v58 = vmul.f32 %v1922_v10, %v1922_v10 }
 0x4c5   : > { %514 = vadd.xlane.f32.xlu0 %v513_v62  ;;  %v519_v47 = vadd.f32 %v518_v58, %v517_v57 }
 0x4c7   : > { %520 = vadd.xlane.f32.xlu1 %v519_v47 }
 0x4d2   : > { %v797_v22 = vpop.f32.mrf.mxu2  ;;  %v817_v26 = vpop.f32.mrf.mxu3 }
 0x4d3   : > { %v1930_v48 = vadd.f32 %v797_v22, %v468_v9  ;;  %v1932_v24 = vadd.f32 %v817_v26, %v468_v9  ;;  %v1229_v9 = vld [vmem:[%s1461_s14] sm:$0xff]  ;;  %v1231_v22 = vld [vmem:[%s1461_s14 + $0x10] sm:$0xff] }
 0x4d5   : > { %v820_v28 = vadd.f32 %v1932_v24, %v1930_v48  ;;  %v824_v50 = vmul.f32 %v1930_v48, %v1930_v48  ;;  %v825_v51 = vmul.f32 %v1932_v24, %v1932_v24 }
 0x4d7   : > { %821 = vadd.xlane.f32.xlu2 %v820_v28  ;;  %v826_v52 = vadd.f32 %v825_v51, %v824_v50  ;;  %v1232_v28 = vld [vmem:[%s1461_s14 + $0x18] sm:$0xff] }
 0x4d9   : > { %827 = vadd.xlane.f32.xlu0 %v826_v52 }
 0x538   : > { %v515_v54 = vpop.xlane.xlu0 %514 }
 0x539   : > { %v516_v55 = vmul.f32 0.00390625, %v515_v54 }
 0x53a   : > { %v521_v56 = vpop.xlane.xlu1 %520 }
 0x53b   : > { %v523_v60 = vmul.f32 %v516_v55, %v516_v55  ;;  %v522_v21 = vmul.f32 0.00390625, %v521_v56 }
 0x53d   : > { %v524_v27 = vsub.f32 %v522_v21, %v523_v60 }
 0x53f   : > { %v525_v63 = vmax.f32 %v524_v27, 0.0 }
 0x541   : > { %v526_v3 = vadd.f32 1e-05, %v525_v63 }
 0x543   : > { %1225 = vrsqrt.f32 %v526_v3  ;;  %vm533_vm0 = vweird.f32 %v526_v3 }
 0x549   : > { %v1226_v5 = vpop.eup %1225 }
 0x54a   : > { %v528_v7 = vmul.f32 %v1226_v5, %v526_v3  ;;  %v822_v8 = vpop.xlane.xlu2 %821  ;;  %vm534_vm1 = vweird.f32 %v1226_v5 }
 0x54b   : > { %v823_v11 = vmul.f32 0.00390625, %v822_v8  ;;  %vm535_vm2 = vmor %vm533_vm0, %vm534_vm1 }
 0x54c   : > { %v529_v12 = vmul.f32 %v1226_v5, %v528_v7  ;;  %v828_v49 = vpop.xlane.xlu0 %827 }
 0x54d   : > { %v830_v13 = vmul.f32 %v823_v11, %v823_v11  ;;  %v829_v31 = vmul.f32 0.00390625, %v828_v49 }
 0x54e   : > { %v530_v14 = vmul.f32 0.5, %v529_v12 }
 0x54f   : > { %v831_v15 = vsub.f32 %v829_v31, %v830_v13 }
 0x550   : > { %v531_v0 = vsub.f32 1.5, %v530_v14 }
 0x551   : > { %v832_v1 = vmax.f32 %v831_v15, 0.0 }
 0x552   : > { %v532_v16 = vmul.f32 %v1226_v5, %v531_v0 }
 0x553   : > { %v833_v17 = vadd.f32 1e-05, %v832_v1 }
 0x554   : > { %v536_v18 = vsel %vm535_vm2, %v1226_v5, %v532_v16 }
 0x555   : > { %1227 = vrsqrt.f32 %v833_v17  ;;  %v537_v19 = vmul.f32 %v536_v18, %v1595_v6  ;;  %vm840_vm4 = vweird.f32 %v833_v17 }
 0x557   : > { %546 = vperm.xlu0 %1217, %v537_v19   ;;  %v538_v23 = vmul.f32 %v537_v19, %v516_v55 }
 0x559   : > { %540 = vrot.lane.b32.xlu2 %v538_v23, %s1336_s12 }
 0x55b   : > { %v1228_v2 = vpop.eup %1227 }
 0x55c   : > { %v835_v20 = vmul.f32 %v1228_v2, %v833_v17  ;;  %vm841_vm3 = vweird.f32 %v1228_v2 }
 0x55d   : > { %vm842_vm5 = vmor %vm840_vm4, %vm841_vm3 }
 0x55e   : > { %v836_v35 = vmul.f32 %v1228_v2, %v835_v20 }
 0x55f   : > { %1220 = vset.pattern.permute.xlu0 %v1342_v29 }
 0x560   : > { %v837_v30 = vmul.f32 0.5, %v836_v35 }
 0x562   : > { %v838_v59 = vsub.f32 1.5, %v837_v30 }
 0x564   : > { %v839_v61 = vmul.f32 %v1228_v2, %v838_v59 }
 0x566   : > { %v843_v32 = vsel %vm842_vm5, %v1228_v2, %v839_v61 }
 0x567   : > { %v844_v38 = vmul.f32 %v843_v32, %v1595_v6 }
 0x569   : > { %v845_v4 = vmul.f32 %v844_v38, %v823_v11 }
 0x56b   : > { %847 = vrot.lane.b32.xlu1 %v845_v4, %s1336_s12  ;;  %s1277_s12 = sshra.s32 %s887_s8, 4  ;;  %s1278_s12 = int_to_ptr.hbm [resolvable:$true] %s1277_s12 }
 0x56c   : > { %s1279_s13 = scalar_lea.hbm %s1278_s12, 32  ;;  %p1284_p0 = scmp.lt.s32.totalorder %s1278_s12, %s1994_s4 }
 0x56d   : > { %p1280_p6 = scmp.ne.s32.totalorder %s1278_s12, %s1279_s13  ;;  %p1285_p1 = scmp.lt.s32.totalorder %s1283_s23, %s1279_s13 }
 0x56f   : > { %p1281_p9 = pnand %p1280_p6, %p1419_p11  ;;  %p1286_p3 = por %p1285_p1, %p1284_p0 }
 0x571   : > { %p1282_p13 = pneg %p1281_p9 }
 0x573   : > { %853 = vperm.xlu1 %1219, %v844_v38   ;;  %p1287_p4 = pnand %p1286_p3, %p1282_p13 }
 0x5b3   : > { %v541_v39 = vpop.permute.xlu2 %540 }
 0x5b4   : > { %v543_v40 = vsub.f32 %v1595_v6, %v541_v39 }
 0x5b6   : > { %553 = vperm.xlu2 %1218, %v543_v40  }
 0x5c9   : > { %v547_v33 = vpop.permute.xlu0 %546 }
 0x5ca   : > { %v549_v34 = vmul.f32 %v547_v33, %v1920_v45  ;;  %v550_v36 = vmul.f32 %v547_v33, %v1922_v10 }
 0x5dd   : > { %v848_v41 = vpop.permute.xlu1 %847 }
 0x5de   : > { %v850_v42 = vsub.f32 %v1595_v6, %v848_v41 }
 0x5e0   : > { %860 = vperm.xlu2 %1218, %v850_v42  }
 0x5e5   : > { %v854_v6 = vpop.permute.xlu1 %853 }
 0x5e6   : > { %v856_v45 = vmul.f32 %v854_v6, %v1930_v48  ;;  %v857_v10 = vmul.f32 %v854_v6, %v1932_v24 }
 0x610   : > { %v554_v37 = vpop.permute.xlu2 %553 }
 0x611   : > { %v556_v43 = vadd.f32 %v554_v37, %v549_v34  ;;  %v557_v25 = vadd.f32 %v554_v37, %v550_v36 }
 0x613   : > { %v558_v44 = vadd.f32 %v1229_v9, %v556_v43  ;;  %v559_v62 = vadd.f32 %v1230_v46, %v557_v25 }
 0x615   : > { %560 = vst [vmem:[%s218_s5] sm:$0xff] %v558_v44 }
 0x616   : > { %561 = vst [vmem:[%s218_s5 + $0x8] sm:$0xff] %v559_v62 }
 0x63a   : > { %v861_v57 = vpop.permute.xlu2 %860 }
 0x63b   : > { %v863_v58 = vadd.f32 %v861_v57, %v856_v45  ;;  %v864_v47 = vadd.f32 %v861_v57, %v857_v10 }
 0x63d   : > { %v865_v26 = vadd.f32 %v1231_v22, %v863_v58  ;;  %v866_v50 = vadd.f32 %v1232_v28, %v864_v47 }
 0x63f   : > { %980 = vst [vmem:[%s218_s5 + $0x10] sm:$0xff] %v865_v26 }
 0x640   : > { %981 = vst [vmem:[%s218_s5 + $0x18] sm:$0xff] %v866_v50 }
 0x641   : > { %1290 = shalt.err (!%p1287_p4)
}
 0x642   : > { %s1343_s7 = smov 256  }
 0x643   : > { %994 = dma.vmem_to_hbm [thread:$0]  (%p1419_p11), %s885_s11, 512, %s887_s8, %s871_s19, %s1343_s7, %s1343_s7, %s1334_s9  }
 0x644 PF: > { %s901_s14 = sand.u32 1, %s1317_s15   ;;  %p2008_p7 = scmp.ge.s32.totalorder %s1329_s18, 2 }
 0x645   : > { %s902_s5 = scalar_lea.sflag [#allocation4], %s901_s14 }
 0x646   : > { %p1001_p5 = pnand %p2008_p7, %p1423_p12 }
 0x648   : > { %p1002_p8 = pneg %p1001_p5 }
 0x64a   : > { %1312 = dma.done.wait (%p1002_p8), %s902_s5, 512  }
 0x64b   : > { %1314 = vsyncadd (%p1002_p8), %s902_s5, 4294966784  ;;  %p17_p10 = scmp.ge.s32.totalorder %s1394_s21, 4   ;;  %s2009_s15 = smov %s1321_s16 }
 0x64c   : > { %s2010_s16 = smov %s1325_s17  ;;  %s2011_s17 = smov %s1406_s24 }
 0x64d   : > { %s2012_s18 = smov %s1394_s21  ;;  %19 = sbr.rel (!%p17_p10) target bundleno = 5 (0x5), region = 83 }
 0x652   :  { %908 = vsyncpa [#allocation3], 1 }
 0x653   :  { %910 = vsyncpa [#allocation3 + $0x1], 1 }
 0x654   :  { %911 = vsyncpa [#allocation4], 1 }
 0x655   :  { %913 = vsyncpa [#allocation4 + $0x1], 1 }

// kernel: tpu_custom_call.1
= control target key start
LH: loop header
LB: loop body
LE: loop exit
PB: predicated region body
PF: predicated region fallthrough
CT: control target
= control target key end

     0   :  { %9 = vsyncpa [#allocation3], 0  ;;  %s1990_s0 = inlined_call_operand.hbm [shape: f32[4,8,256], index: 0, kind: input, shape index: {}, may-alias: {0,4}]   ;;  %s1991_s1 = inlined_call_operand.vmem [shape: f32[8,72], index: 1, kind: input, shape index: {}]   ;;  %s1992_s2 = inlined_call_operand.vmem [shape: f32[8,72], index: 2, kind: input, shape index: {}]   ;;  %s1993_s3 = inlined_call_operand.vmem [shape: f32[8,8], index: 3, kind: input, shape index: {}]   ;;  %s1994_s4 = inlined_call_operand.hbm [shape: f32[4,8,256], index: 4, kind: output, shape index: {}, may-alias: {0,4}]  }
   0x1   :  { %11 = vsyncpa [#allocation3 + $0x1], 0 }
   0x2   :  { %12 = vsyncpa [#allocation4], 0 }
   0x3   :  { %14 = vsyncpa [#allocation4 + $0x1], 0  ;;  %s1369_s15 = smov 0   ;;  %s1371_s16 = smov 0  }
   0x4   :  { %s1373_s17 = smov 0   ;;  %s1375_s18 = smov 0  }
   0x5 LB: > { %s1390_s19 = sadd.s32 4294967295, %s1329_s18   ;;  %s960_s20 = sadd.s32 4294967294, %s1329_s18   ;;  %s1329_s18 = sphi %s1375_s18, %s2012_s18   ;;  %s1325_s17 = sphi %s1373_s17, %s2011_s17   ;;  %s1321_s16 = sphi %s1371_s16, %s2010_s16   ;;  %s1317_s15 = sphi %s1369_s15, %s2009_s15  }
   0x6   : > { %s1394_s21 = sadd.s32 1, %s1329_s18   ;;  %s27_s22 = sadd.s32 1, %s1325_s17 }
   0x7   : > { %s24_s23 = ssub.s32 %s1329_s18, %s1394_s21  ;;  %p34_p0 = scmp.ne.s32.totalorder %s1325_s17, %s1321_s16 }
   0x8   : > { %p25_p1 = scmp.eq.s32.totalorder %s24_s23, 0  ;;  %p35_p2 = scmp.eq.s32.totalorder %s1329_s18, 0 }
   0x9   : > { %p40_p3 = scmp.ne.s32.totalorder %s1321_s16, %s1317_s15  ;;  %p41_p4 = scmp.eq.s32.totalorder %s1390_s19, 0 }
   0xa   : > { %s1406_s24 = scalar_select %p25_p1, %s1325_s17, %s27_s22  }
   0xb   : > { %p1408_p5 = por %p35_p2, %p34_p0  ;;  %p1412_p6 = por %p41_p4, %p40_p3 }
   0xc   : > { %p127_p7 = scmp.eq.s32.totalorder %s1390_s19, 1  ;;  %p133_p8 = scmp.eq.s32.totalorder %s960_s20, 1 }
   0xd   : > { %p1004_p10 = scmp.lt.s32.totalorder %s1329_s18, 2  ;;  %s162_s29 = sand.u32 1, %s1325_s17  }
   0xe   : > { %p1419_p11 = por %p127_p7, %p34_p0  ;;  %p1423_p12 = por %p133_p8, %p40_p3 }
   0xf   : > { %s989_s30 = sshll.u32 %s1329_s18, 5  ;;  %s963_s5 = sshll.u32 %s162_s29, 5 }
  0x10   : > { %s172_s8 = scalar_lea.hbm %s1990_s0, %s989_s30  ;;  %s166_s10 = scalar_lea.vmem [#allocation2], %s963_s5 }
  0x11   : > { %s173_s9 = sshll.u32 %s172_s8, 4  ;;  %s175_s11 = sshll.u32 %s166_s10, 4  ;;  %s174_s9 = int_to_ptr.hbm [resolvable:$true] %s173_s9  ;;  %s176_s11 = int_to_ptr.vmem [resolvable:$true] %s175_s11 }
  0x12   : > { %p1434_p13 = pnand %p1004_p10, %p1408_p5  ;;  %p967_p0 = scmp.ge.s32.totalorder %s1329_s18, 1 }
  0x13   : > { %p183_p1 = scmp.lt.s32.totalorder %s1329_s18, 3  ;;  %s163_s13 = scalar_lea.sflag [#allocation3], %s162_s29 }
  0x14   : > { %s1233_s14 = sshra.s32 %s174_s9, 4  ;;  %p1237_p3 = pneg %p1434_p13  ;;  %s1234_s14 = int_to_ptr.hbm [resolvable:$true] %s1233_s14 }
  0x15   : > { %s1235_s20 = scalar_lea.hbm %s1234_s14, 32  ;;  %s1240_s25 = scalar_lea.hbm %s1990_s0, 64 }
  0x16   : > { %p1236_p2 = scmp.ne.s32.totalorder %s1234_s14, %s1235_s20  ;;  %p1241_p5 = scmp.lt.s32.totalorder %s1234_s14, %s1990_s0 }
  0x17   : > { %p1242_p8 = scmp.lt.s32.totalorder %s1240_s25, %s1235_s20 }
  0x18   : > { %p1238_p4 = pnand %p1237_p3, %p1236_p2 }
  0x19   : > { %p1243_p10 = por %p1242_p8, %p1241_p5 }
  0x1a   : > { %p1239_p7 = pneg %p1238_p4 }
  0x1c   : > { %p1244_p9 = pnand %p1243_p10, %p1239_p7 }
  0x1e   : > { %1247 = shalt.err (!%p1244_p9)
}
  0x1f   : > { %s1331_s29 = smov 256   ;;  %s1332_s6 = smov 16  }
  0x20   : > { %999 = dma.hbm_to_vmem [thread:$0]  (!%p1434_p13), %s174_s9, 512, %s176_s11, %s163_s13, %s1331_s29, %s1331_s29, %s1332_s6  }
  0x21   : > { %p184_p2 = pnand %p967_p0, %p183_p1 }
  0x22   : > { %s1455_s7 = sand.u32 (!%p184_p2), 1, %s1321_s16  }
  0x23   : > { %187 = sbr.rel (%p184_p2) target bundleno = 1604 (0x644), region = 36  ;;  %s968_s8 = sshll.u32 (!%p184_p2), %s1455_s7, 5 }
  0x24   : > { %s190_s10 = scalar_lea.sflag (!%p184_p2), [#allocation3], %s1455_s7  ;;  %s1461_s14 = scalar_lea.vmem (!%p184_p2), [#allocation2], %s968_s8 }
  0x28   : > { %1308 = dma.done.wait (%p1412_p6), %s190_s10, 512  }
  0x29   : > { %1310 = vsyncadd (%p1412_p6), %s190_s10, 4294966784  ;;  %v1468_v0 = vld [vmem:[%s1461_s14 + $0x10] sm:$0xff]  ;;  %v1471_v1 = vld [vmem:[%s1461_s14 + $0x18] sm:$0xff]  ;;  %s1333_s26 = smov 112   ;;  %s1334_s9 = smov 16   ;;  %v221_v6 = vlaneseq  ;;  %v1337_v61 = vmov 0  }
  0x2a   : > { %v1474_v2 = vld [vmem:[%s1461_s14] sm:$0xff]  ;;  %v1061_v3 = vpack.i.bf16 %v1471_v1, %v1468_v0  ;;  %v1479_v4 = vld [vmem:[%s1461_s14 + $0x8] sm:$0xff]  ;;  %s1335_s11 = smov 127   ;;  %s1336_s12 = smov 1   ;;  %1131 = vset.pattern.permute.xlu1 %v1337_v61  ;;  %vm311_vm9 = vcmask 588800  }
  0x2b   : > { %v1051_v5 = vpack.i.bf16 %v1479_v4, %v1474_v2  ;;  %v1489_v9 = vand.u32 127, %v221_v6  ;;  %v1595_v6 = vld [vmem:[%s1993_s3] sm:$0xff]  ;;  %s218_s5 = scalar_lea.vmem [#allocation5], %s968_s8  ;;  %s991_s29 = sshll.u32 %s1390_s19, 5 }
  0x2c   : > { %1062 = vrot.lane.b32.xlu1 %v1061_v3, %s1333_s26  ;;  %s871_s19 = scalar_lea.sflag [#allocation4], %s1455_s7  ;;  %s1283_s23 = scalar_lea.hbm %s1994_s4, 64 }
  0x2d   : > { %1052 = vrot.lane.b32.xlu0 %v1051_v5, %s1333_s26  ;;  %v1492_v10 = vadd.s32 128, %v1489_v9  ;;  %vm243_vm0 = vcmp.lt.s32.totalorder %v1489_v9, 112  ;;  %vm226_vm1 = vcmp.lt.s32.totalorder %v1489_v9, 16  ;;  %v224_v39 = vand.u32 15, %v1489_v9 }
  0x2e   : > { %vm260_vm3 = vcmp.lt.s32.totalorder %v1489_v9, 1  ;;  %vm267_vm4 = vcmp.lt.s32.totalorder %v1489_v9, 127 }
  0x2f   : > { %vm229_vm2 = vcmp.ge.s32.totalorder %v1492_v10, 240  ;;  %v225_v38 = vand.u32 15, %v1492_v10  ;;  %vm1560_vm6 = vcmp.eq.s32.totalorder %v224_v39, 15  ;;  %vm1582_vm8 = vcmp.eq.s32.totalorder %v224_v39, 0 }
  0x31   : > { %vm1556_vm5 = vcmp.eq.s32.totalorder %v225_v38, 15  ;;  %vm1572_vm7 = vcmp.eq.s32.totalorder %v225_v38, 0  ;;  %v234_v38 = vld [vmem:[%s1991_s1] sm:$0xff] }
  0x34   : > { %1067 = vrot.lane.b32.xlu1 %v1061_v3, %s1334_s9 }
  0x35   : > { %1057 = vrot.lane.b32.xlu0 %v1051_v5, %s1334_s9 }
  0x3c   : > { %1077 = vrot.lane.b32.xlu1 %v1051_v5, %s1335_s11 }
  0x3d   : > { %1072 = vrot.lane.b32.xlu0 %v1051_v5, %s1336_s12 }
  0x9e   : > { %v1063_v7 = vpop.permute.xlu1 %1062 }
  0x9f   : > { %v1053_v8 = vpop.permute.xlu0 %1052  ;;  %v1065_v11 = vunpack.i.h.bf16 %v1063_v7  ;;  %v1064_v12 = vunpack.i.l.bf16 %v1063_v7 }
  0xa0   : > { %v1055_v13 = vunpack.i.h.bf16 %v1053_v8  ;;  %v1054_v14 = vunpack.i.l.bf16 %v1053_v8 }
  0xa1   : > { %v1499_v21 = vsel %vm243_vm0, %v1064_v12, %v1065_v11  ;;  %v570_v22 = vsel %vm243_vm0, %v1065_v11, %v1064_v12 }
  0xa2   : > { %v244_v24 = vsel %vm243_vm0, %v1054_v14, %v1055_v13  ;;  %v245_v28 = vsel %vm243_vm0, %v1055_v13, %v1054_v14 }
  0xa6   : > { %v1068_v15 = vpop.permute.xlu1 %1067 }
  0xa7   : > { %v1070_v16 = vunpack.i.h.bf16 %v1068_v15  ;;  %v1069_v17 = vunpack.i.l.bf16 %v1068_v15  ;;  %v1058_v18 = vpop.permute.xlu0 %1057 }
  0xa8   : > { %v1060_v19 = vunpack.i.h.bf16 %v1058_v18  ;;  %v1059_v20 = vunpack.i.l.bf16 %v1058_v18 }
  0xa9   : > { %v1505_v23 = vsel %vm226_vm1, %v1069_v17, %v1070_v16  ;;  %v576_v34 = vsel %vm226_vm1, %v1070_v16, %v1069_v17 }
  0xaa   : > { %v1511_v25 = vsel %vm226_vm1, %v1059_v20, %v1060_v19  ;;  %v251_v26 = vsel %vm226_vm1, %v1060_v19, %v1059_v20  ;;  %v1518_v27 = vsel %vm229_vm2, %v1505_v23, %v570_v22  ;;  %v1544_v35 = vsel %vm226_vm1, %v1499_v21, %v576_v34 }
  0xab   : > { %v1096_v29 = vpack.i.bf16 %v1518_v27, %v1499_v21  ;;  %v255_v30 = vsel %vm229_vm2, %v1511_v25, %v245_v28  ;;  %v1529_v31 = vsel %vm226_vm1, %v244_v24, %v251_v26  ;;  %v1126_v36 = vpack.i.bf16 %v1505_v23, %v1544_v35 }
  0xac   : > { %v1081_v32 = vpack.i.bf16 %v255_v30, %v244_v24  ;;  %v1106_v33 = vpack.i.bf16 %v1511_v25, %v1529_v31 }
  0xad   : > { %1097 = vrot.lane.b32.xlu0 %v1096_v29, %s1335_s11 }
  0xae   : > { %1082 = vrot.lane.b32.xlu2 %v1081_v32, %s1336_s12  ;;  %1107 = vrot.lane.b32.xlu1 %v1106_v33, %s1336_s12  ;;  %v1078_v43 = vpop.permute.xlu1 %1077 }
  0xaf   : > { %v1073_v40 = vpop.permute.xlu0 %1072  ;;  %v1080_v51 = vunpack.i.h.bf16 %v1078_v43  ;;  %v1079_v52 = vunpack.i.l.bf16 %v1078_v43 }
  0xb0   : > { %v1075_v47 = vunpack.i.h.bf16 %v1073_v40  ;;  %v1074_v48 = vunpack.i.l.bf16 %v1073_v40 }
  0xb1   : > { %v284_v63 = vsel %vm267_vm4, %v1079_v52, %v1080_v51  ;;  %v285_v5 = vsel %vm267_vm4, %v1080_v51, %v1079_v52 }
  0xb2   : > { %v279_v60 = vsel %vm260_vm3, %v1075_v47, %v1074_v48 }
  0xb3   : > { %v288_v12 = vsel %vm1560_vm6, %v279_v60, %v284_v63  ;;  %v286_v14 = vsel %vm1582_vm8, %v284_v63, %v279_v60 }
  0xb5   : > { %1102 = vrot.lane.b32.xlu0 %v1061_v3, %s1336_s12 }
  0xb6   : > { %1087 = vrot.lane.b32.xlu2 %v1081_v32, %s1335_s11  ;;  %1112 = vrot.lane.b32.xlu1 %v1061_v3, %s1335_s11  ;;  %v278_v3 = vsel %vm260_vm3, %v1074_v48, %v1075_v47 }
  0xb7   : > { %v289_v13 = vsel %vm1556_vm5, %v278_v3, %v285_v5  ;;  %v287_v15 = vsel %vm1572_vm7, %v285_v5, %v278_v3 }
  0xbd   : > { %1127 = vrot.lane.b32.xlu0 %v1126_v36, %s1335_s11 }
  0xbe   : > { %1092 = vrot.lane.b32.xlu2 %v1096_v29, %s1336_s12  ;;  %308 = vperm.xlu1 %1131, %v1595_v6  }
  0xc6   : > { %1117 = vrot.lane.b32.xlu2 %v1106_v33, %s1335_s11 }
  0xce   : > { %1122 = vrot.lane.b32.xlu2 %v1126_v36, %s1336_s12 }
 0x108   : > { %v1083_v37 = vpop.permute.xlu2 %1082 }
 0x109   : > { %v1085_v41 = vunpack.i.h.bf16 %v1083_v37  ;;  %v1084_v42 = vunpack.i.l.bf16 %v1083_v37 }
 0x10b   : > { %v295_v53 = vsel %vm260_vm3, %v1085_v41, %v1084_v42  ;;  %v294_v55 = vsel %vm260_vm3, %v1084_v42, %v1085_v41 }
 0x110   : > { %v1088_v45 = vpop.permute.xlu2 %1087 }
 0x111   : > { %v1090_v49 = vunpack.i.h.bf16 %v1088_v45  ;;  %v1089_v50 = vunpack.i.l.bf16 %v1088_v45 }
 0x113   : > { %v300_v54 = vsel %vm267_vm4, %v1089_v50, %v1090_v49  ;;  %v301_v56 = vsel %vm267_vm4, %v1090_v49, %v1089_v50 }
 0x114   : > { %v304_v58 = vsel %vm1560_vm6, %v295_v53, %v300_v54  ;;  %v305_v59 = vsel %vm1556_vm5, %v294_v55, %v301_v56  ;;  %v302_v8 = vsel %vm1582_vm8, %v300_v54, %v295_v53  ;;  %v303_v11 = vsel %vm1572_vm7, %v301_v56, %v294_v55 }
 0x115   : > { %322 = vmatpush.msra.mxu0 %v304_v58  ;;  %342 = vmatpush.msra.mxu1 %v305_v59 }
 0x117   : > { %323 = vmatpush.msra.mxu0 %v244_v24  ;;  %343 = vmatpush.msra.mxu1 %v255_v30 }
 0x118   : > { %v1093_v7 = vpop.permute.xlu2 %1092 }
 0x119   : > { %324 = vmatpush.msra.mxu0 %v302_v8  ;;  %344 = vmatpush.msra.mxu1 %v303_v11  ;;  %v1095_v34 = vunpack.i.h.bf16 %v1093_v7  ;;  %v1094_v36 = vunpack.i.l.bf16 %v1093_v7 }
 0x11b   : > { %325 = vmatpush.msra.mxu0 %v288_v12  ;;  %345 = vmatpush.msra.mxu1 %v289_v13  ;;  %v618_v48 = vsel %vm260_vm3, %v1095_v34, %v1094_v36  ;;  %v617_v49 = vsel %vm260_vm3, %v1094_v36, %v1095_v34 }
 0x11d   : > { %326 = vmatpush.msra.mxu0 %v1474_v2  ;;  %346 = vmatpush.msra.mxu1 %v1479_v4 }
 0x11f   : > { %327 = vmatpush.msra.mxu0 %v286_v14  ;;  %347 = vmatpush.msra.mxu1 %v287_v15  ;;  %v1098_v16 = vpop.permute.xlu0 %1097 }
 0x120   : > { %v1118_v17 = vpop.permute.xlu2 %1117  ;;  %v1108_v18 = vpop.permute.xlu1 %1107  ;;  %v1100_v26 = vunpack.i.h.bf16 %v1098_v16  ;;  %v1099_v28 = vunpack.i.l.bf16 %v1098_v16 }
 0x121   : > { %v1120_v19 = vunpack.i.h.bf16 %v1118_v17  ;;  %v1119_v20 = vunpack.i.l.bf16 %v1118_v17  ;;  %v1110_v22 = vunpack.i.h.bf16 %v1108_v18  ;;  %v1109_v24 = vunpack.i.l.bf16 %v1108_v18 }
 0x122   : > { %v623_v39 = vsel %vm267_vm4, %v1099_v28, %v1100_v26  ;;  %v624_v40 = vsel %vm267_vm4, %v1100_v26, %v1099_v28 }
 0x123   : > { %v262_v2 = vsel %vm260_vm3, %v1110_v22, %v1109_v24  ;;  %v268_v4 = vsel %vm267_vm4, %v1119_v20, %v1120_v19  ;;  %v261_v29 = vsel %vm260_vm3, %v1109_v24, %v1110_v22  ;;  %v269_v30 = vsel %vm267_vm4, %v1120_v19, %v1119_v20 }
 0x124   : > { %v272_v32 = vsel %vm1560_vm6, %v262_v2, %v268_v4  ;;  %v273_v33 = vsel %vm1556_vm5, %v261_v29, %v269_v30  ;;  %v627_v50 = vsel %vm1560_vm6, %v618_v48, %v623_v39  ;;  %v628_v51 = vsel %vm1556_vm5, %v617_v49, %v624_v40 }
 0x125   : > { %328 = vmatpush.msra.mxu0 %v272_v32  ;;  %348 = vmatpush.msra.mxu1 %v273_v33  ;;  %v625_v58 = vsel %vm1582_vm8, %v623_v39, %v618_v48  ;;  %v626_v59 = vsel %vm1572_vm7, %v624_v40, %v617_v49 }
 0x127   : > { %329 = vmatpush.msra.mxu0 %v1529_v31  ;;  %349 = vmatpush.msra.mxu1 %v1511_v25  ;;  %v1103_v37 = vpop.permute.xlu0 %1102  ;;  %v270_v31 = vsel %vm1582_vm8, %v268_v4, %v262_v2  ;;  %v271_v25 = vsel %vm1572_vm7, %v269_v30, %v261_v29 }
 0x128   : > { %v1105_v41 = vunpack.i.h.bf16 %v1103_v37  ;;  %v1104_v42 = vunpack.i.l.bf16 %v1103_v37  ;;  %v1113_v43 = vpop.permute.xlu1 %1112  ;;  %v1123_v52 = vpop.permute.xlu2 %1122  ;;  %v1338_v37 = vmov 1  }
 0x129   : > { %v1115_v45 = vunpack.i.h.bf16 %v1113_v43  ;;  %v1114_v47 = vunpack.i.l.bf16 %v1113_v43  ;;  %330 = vmatpush.msra.mxu0 %v270_v31  ;;  %350 = vmatpush.msra.mxu1 %v271_v25  ;;  %v1125_v60 = vunpack.i.h.bf16 %v1123_v52  ;;  %v1124_v61 = vunpack.i.l.bf16 %v1123_v52 }
 0x12a   : > { %970 = vmatmul.msk.f32.vlgmr.msra.gmra.mxu0 %vm311_vm9, %v234_v38  ;;  %971 = vmatmul.msk.f32.vlgmr.msra.gmra.mxu1 %vm311_vm9, %v234_v38  ;;  %v602_v53 = vsel %vm260_vm3, %v1105_v41, %v1104_v42  ;;  %v601_v55 = vsel %vm260_vm3, %v1104_v42, %v1105_v41 }
 0x12b   : > { %636 = vmatpush.msrb.mxu0 %v627_v50  ;;  %656 = vmatpush.msrb.mxu1 %v628_v51  ;;  %v607_v54 = vsel %vm267_vm4, %v1114_v47, %v1115_v45  ;;  %v608_v56 = vsel %vm267_vm4, %v1115_v45, %v1114_v47  ;;  %v586_v11 = vsel %vm260_vm3, %v1125_v60, %v1124_v61 }
 0x12c   : > { %v611_v3 = vsel %vm1560_vm6, %v602_v53, %v607_v54  ;;  %v612_v5 = vsel %vm1556_vm5, %v601_v55, %v608_v56  ;;  %v585_v12 = vsel %vm260_vm3, %v1124_v61, %v1125_v60  ;;  %v609_v13 = vsel %vm1582_vm8, %v607_v54, %v602_v53  ;;  %1132 = vset.pattern.permute.xlu1 %v1338_v37 }
 0x12d   : > { %637 = vmatpush.msrb.mxu0 %v1499_v21  ;;  %657 = vmatpush.msrb.mxu1 %v1518_v27  ;;  %v610_v14 = vsel %vm1572_vm7, %v608_v56, %v601_v55 }
 0x12e   : > { %1134 = vset.pattern.permute.xlu2 %v1338_v37 }
 0x12f   : > { %638 = vmatpush.msrb.mxu0 %v625_v58  ;;  %658 = vmatpush.msrb.mxu1 %v626_v59  ;;  %v1128_v21 = vpop.permute.xlu0 %1127 }
 0x130   : > { %v1130_v27 = vunpack.i.h.bf16 %v1128_v21  ;;  %v1129_v63 = vunpack.i.l.bf16 %v1128_v21  ;;  %v309_v17 = vpop.permute.xlu1 %308 }
 0x131   : > { %639 = vmatpush.msrb.mxu0 %v611_v3  ;;  %659 = vmatpush.msrb.mxu1 %v612_v5 }
 0x132   : > { %v591_v7 = vsel %vm267_vm4, %v1129_v63, %v1130_v27  ;;  %v592_v8 = vsel %vm267_vm4, %v1130_v27, %v1129_v63 }
 0x133   : > { %640 = vmatpush.msrb.mxu0 %v1468_v0  ;;  %660 = vmatpush.msrb.mxu1 %v1471_v1  ;;  %v595_v15 = vsel %vm1560_vm6, %v586_v11, %v591_v7  ;;  %v596_v0 = vsel %vm1556_vm5, %v585_v12, %v592_v8  ;;  %v593_v1 = vsel %vm1582_vm8, %v591_v7, %v586_v11 }
 0x134   : > { %v594_v16 = vsel %vm1572_vm7, %v592_v8, %v585_v12 }
 0x135   : > { %641 = vmatpush.msrb.mxu0 %v609_v13  ;;  %661 = vmatpush.msrb.mxu1 %v610_v14  ;;  %v1339_v14 = vmov 2  }
 0x136   : > { %1133 = vset.pattern.permute.xlu0 %v1339_v14 }
 0x137   : > { %642 = vmatpush.msrb.mxu0 %v595_v15  ;;  %662 = vmatpush.msrb.mxu1 %v596_v0 }
 0x139   : > { %643 = vmatpush.msrb.mxu0 %v1544_v35  ;;  %663 = vmatpush.msrb.mxu1 %v1505_v23 }
 0x13b   : > { %644 = vmatpush.msrb.mxu0 %v593_v1  ;;  %664 = vmatpush.msrb.mxu1 %v594_v16 }
 0x13c   : > { %976 = vmatmul.msk.f32.vlgmr.msrb.gmra.mxu0 %vm311_vm9, %v234_v38  ;;  %977 = vmatmul.msk.f32.vlgmr.msrb.gmra.mxu1 %vm311_vm9, %v234_v38 }
 0x1a7   : > { %v332_v18 = vpop.f32.mrf.mxu0  ;;  %v352_v19 = vpop.f32.mrf.mxu1 }
 0x1a8   : > { %v1691_v20 = vadd.f32 %v332_v18, %v309_v17  ;;  %v1693_v35 = vadd.f32 %v352_v19, %v309_v17 }
 0x1aa   : > { %v355_v23 = vadd.f32 %v1693_v35, %v1691_v20  ;;  %v359_v22 = vmul.f32 %v1691_v20, %v1691_v20  ;;  %v360_v24 = vmul.f32 %v1693_v35, %v1693_v35 }
 0x1ac   : > { %356 = vadd.xlane.f32.xlu2 %v355_v23  ;;  %v361_v26 = vadd.f32 %v360_v24, %v359_v22 }
 0x1ae   : > { %362 = vadd.xlane.f32.xlu0 %v361_v26 }
 0x1b9   : > { %v646_v28 = vpop.f32.mrf.mxu0  ;;  %v666_v2 = vpop.f32.mrf.mxu1 }
 0x1ba   : > { %v1701_v4 = vadd.f32 %v646_v28, %v309_v17  ;;  %v1703_v29 = vadd.f32 %v666_v2, %v309_v17 }
 0x1bc   : > { %v669_v30 = vadd.f32 %v1703_v29, %v1701_v4  ;;  %v673_v32 = vmul.f32 %v1701_v4, %v1701_v4  ;;  %v674_v33 = vmul.f32 %v1703_v29, %v1703_v29 }
 0x1be   : > { %670 = vadd.xlane.f32.xlu1 %v669_v30  ;;  %v675_v34 = vadd.f32 %v674_v33, %v673_v32 }
 0x1c0   : > { %676 = vadd.xlane.f32.xlu2 %v675_v34 }
 0x21f   : > { %v357_v36 = vpop.xlane.xlu2 %356 }
 0x220   : > { %v358_v38 = vmul.f32 0.00390625, %v357_v36 }
 0x221   : > { %v363_v39 = vpop.xlane.xlu0 %362 }
 0x222   : > { %v365_v40 = vmul.f32 %v358_v38, %v358_v38  ;;  %v364_v41 = vmul.f32 0.00390625, %v363_v39 }
 0x224   : > { %v366_v42 = vsub.f32 %v364_v41, %v365_v40 }
 0x226   : > { %v367_v43 = vmax.f32 %v366_v42, 0.0 }
 0x228   : > { %v368_v31 = vadd.f32 1e-05, %v367_v43 }
 0x22a   : > { %1221 = vrsqrt.f32 %v368_v31  ;;  %vm375_vm10 = vweird.f32 %v368_v31 }
 0x230   : > { %v1222_v25 = vpop.eup %1221 }
 0x231   : > { %v370_v45 = vmul.f32 %v1222_v25, %v368_v31  ;;  %v671_v47 = vpop.xlane.xlu1 %670  ;;  %vm376_vm11 = vweird.f32 %v1222_v25 }
 0x232   : > { %v672_v48 = vmul.f32 0.00390625, %v671_v47  ;;  %vm377_vm12 = vmor %vm375_vm10, %vm376_vm11 }
 0x233   : > { %v371_v49 = vmul.f32 %v1222_v25, %v370_v45  ;;  %v677_v50 = vpop.xlane.xlu2 %676 }
 0x234   : > { %v679_v51 = vmul.f32 %v672_v48, %v672_v48  ;;  %v678_v52 = vmul.f32 0.00390625, %v677_v50 }
 0x235   : > { %v372_v53 = vmul.f32 0.5, %v371_v49 }
 0x236   : > { %v680_v54 = vsub.f32 %v678_v52, %v679_v51 }
 0x237   : > { %v373_v55 = vsub.f32 1.5, %v372_v53 }
 0x238   : > { %v681_v56 = vmax.f32 %v680_v54, 0.0 }
 0x239   : > { %v374_v58 = vmul.f32 %v1222_v25, %v373_v55 }
 0x23a   : > { %v682_v59 = vadd.f32 1e-05, %v681_v56 }
 0x23b   : > { %v378_v60 = vsel %vm377_vm12, %v1222_v25, %v374_v58 }
 0x23c   : > { %1223 = vrsqrt.f32 %v682_v59  ;;  %v379_v61 = vmul.f32 %v378_v60, %v1595_v6  ;;  %vm689_vm14 = vweird.f32 %v682_v59 }
 0x23e   : > { %388 = vperm.xlu1 %1132, %v379_v61   ;;  %v380_v21 = vmul.f32 %v379_v61, %v358_v38 }
 0x240   : > { %382 = vrot.lane.b32.xlu2 %v380_v21, %s1336_s12 }
 0x242   : > { %v1224_v27 = vpop.eup %1223 }
 0x243   : > { %v684_v63 = vmul.f32 %v1224_v27, %v682_v59  ;;  %vm690_vm13 = vweird.f32 %v1224_v27 }
 0x244   : > { %vm691_vm15 = vmor %vm689_vm14, %vm690_vm13 }
 0x245   : > { %v685_v3 = vmul.f32 %v1224_v27, %v684_v63 }
 0x246   : > { %1135 = vset.pattern.permute.xlu1 %v1339_v14 }
 0x247   : > { %v686_v5 = vmul.f32 0.5, %v685_v3 }
 0x249   : > { %v687_v7 = vsub.f32 1.5, %v686_v5 }
 0x24b   : > { %v688_v8 = vmul.f32 %v1224_v27, %v687_v7 }
 0x24d   : > { %v692_v11 = vsel %vm691_vm15, %v1224_v27, %v688_v8 }
 0x24e   : > { %v693_v12 = vmul.f32 %v692_v11, %v1595_v6 }
 0x250   : > { %702 = vperm.xlu2 %1134, %v693_v12   ;;  %v694_v13 = vmul.f32 %v693_v12, %v672_v48 }
 0x252   : > { %696 = vrot.lane.b32.xlu0 %v694_v13, %s1336_s12 }
 0x29a   : > { %v383_v15 = vpop.permute.xlu2 %382 }
 0x29b   : > { %v385_v0 = vsub.f32 %v1595_v6, %v383_v15 }
 0x29d   : > { %395 = vperm.xlu0 %1133, %v385_v0  }
 0x2b0   : > { %v389_v17 = vpop.permute.xlu1 %388 }
 0x2b1   : > { %v391_v18 = vmul.f32 %v389_v17, %v1691_v20  ;;  %v392_v19 = vmul.f32 %v389_v17, %v1693_v35  ;;  %v703_v20 = vpop.permute.xlu2 %702 }
 0x2b2   : > { %v705_v35 = vmul.f32 %v703_v20, %v1701_v4  ;;  %v706_v30 = vmul.f32 %v703_v20, %v1703_v29 }
 0x2c4   : > { %v697_v1 = vpop.permute.xlu0 %696 }
 0x2c5   : > { %v699_v16 = vsub.f32 %v1595_v6, %v697_v1 }
 0x2c7   : > { %709 = vperm.xlu1 %1135, %v699_v16  }
 0x30f   : > { %v396_v23 = vpop.permute.xlu0 %395 }
 0x310   : > { %v1719_v22 = vadd.f32 %v396_v23, %v391_v18  ;;  %v1721_v24 = vadd.f32 %v396_v23, %v392_v19 }
 0x312   : > { %v400_v26 = vmax.f32 %v1719_v22, 0.0  ;;  %v401_v28 = vmax.f32 %v1721_v24, 0.0 }
 0x314   : > { %v1141_v2 = vpack.i.bf16 %v401_v28, %v400_v26 }
 0x316   : > { %1142 = vrot.lane.b32.xlu1 %v1141_v2, %s1334_s9  ;;  %1137 = vrot.lane.b32.xlu2 %v1141_v2, %s1333_s26 }
 0x31e   : > { %1162 = vrot.lane.b32.xlu1 %v1141_v2, %s1335_s11 }
 0x339   : > { %v710_v32 = vpop.permute.xlu1 %709 }
 0x33a   : > { %v1734_v33 = vadd.f32 %v710_v32, %v705_v35  ;;  %v1736_v34 = vadd.f32 %v710_v32, %v706_v30 }
 0x33c   : > { %v714_v36 = vmax.f32 %v1734_v33, 0.0  ;;  %v715_v37 = vmax.f32 %v1736_v34, 0.0 }
 0x33e   : > { %v1151_v38 = vpack.i.bf16 %v715_v37, %v714_v36 }
 0x340   : > { %1152 = vrot.lane.b32.xlu2 %v1151_v38, %s1334_s9  ;;  %1147 = vrot.lane.b32.xlu0 %v1151_v38, %s1333_s26  ;;  %s883_s26 = scalar_lea.hbm %s1994_s4, %s991_s29 }
 0x341   : > { %s886_s8 = sshll.u32 %s883_s26, 4  ;;  %s887_s8 = int_to_ptr.hbm [resolvable:$true] %s886_s8 }
 0x348   : > { %1157 = vrot.lane.b32.xlu2 %v1141_v2, %s1336_s12 }
 0x370   : > { %v1138_v4 = vpop.permute.xlu2 %1137 }
 0x371   : > { %v1140_v29 = vunpack.i.h.bf16 %v1138_v4  ;;  %v1139_v39 = vunpack.i.l.bf16 %v1138_v4 }
 0x373   : > { %v407_v43 = vsel %vm243_vm0, %v1140_v29, %v1139_v39  ;;  %v406_v25 = vsel %vm243_vm0, %v1139_v39, %v1140_v29 }
 0x388   : > { %v1143_v40 = vpop.permute.xlu1 %1142 }
 0x389   : > { %v1145_v41 = vunpack.i.h.bf16 %v1143_v40  ;;  %v1144_v42 = vunpack.i.l.bf16 %v1143_v40 }
 0x38b   : > { %v1751_v31 = vsel %vm226_vm1, %v1144_v42, %v1145_v41  ;;  %v413_v48 = vsel %vm226_vm1, %v1145_v41, %v1144_v42 }
 0x38c   : > { %v417_v45 = vsel %vm229_vm2, %v1751_v31, %v407_v43  ;;  %v1764_v49 = vsel %vm226_vm1, %v406_v25, %v413_v48 }
 0x38d   : > { %v1171_v47 = vpack.i.bf16 %v417_v45, %v406_v25  ;;  %v1176_v50 = vpack.i.bf16 %v1751_v31, %v1764_v49 }
 0x38f   : > { %1172 = vrot.lane.b32.xlu0 %v1171_v47, %s1335_s11  ;;  %1167 = vrot.lane.b32.xlu1 %v1171_v47, %s1336_s12 }
 0x390   : > { %v1163_v3 = vpop.permute.xlu1 %1162 }
 0x391   : > { %v1165_v2 = vunpack.i.h.bf16 %v1163_v3  ;;  %v1164_v20 = vunpack.i.l.bf16 %v1163_v3  ;;  %v235_v3 = vld [vmem:[%s1992_s2] sm:$0xff] }
 0x393   : > { %v444_v4 = vsel %vm267_vm4, %v1164_v20, %v1165_v2  ;;  %v445_v29 = vsel %vm267_vm4, %v1165_v2, %v1164_v20 }
 0x397   : > { %1177 = vrot.lane.b32.xlu1 %v1176_v50, %s1336_s12 }
 0x39a   : > { %v1153_v51 = vpop.permute.xlu2 %1152 }
 0x39b   : > { %v1155_v52 = vunpack.i.h.bf16 %v1153_v51  ;;  %v1154_v53 = vunpack.i.l.bf16 %v1153_v51 }
 0x39d   : > { %v1772_v58 = vsel %vm226_vm1, %v1154_v53, %v1155_v52  ;;  %v727_v27 = vsel %vm226_vm1, %v1155_v52, %v1154_v53 }
 0x39f   : > { %1202 = vrot.lane.b32.xlu1 %v1151_v38, %s1335_s11 }
 0x3a2   : > { %v1158_v5 = vpop.permute.xlu2 %1157 }
 0x3a3   : > { %v1160_v15 = vunpack.i.h.bf16 %v1158_v5  ;;  %v1159_v0 = vunpack.i.l.bf16 %v1158_v5 }
 0x3a5   : > { %v439_v35 = vsel %vm260_vm3, %v1160_v15, %v1159_v0  ;;  %v438_v30 = vsel %vm260_vm3, %v1159_v0, %v1160_v15 }
 0x3a6   : > { %v448_v39 = vsel %vm1560_vm6, %v439_v35, %v444_v4  ;;  %v449_v40 = vsel %vm1556_vm5, %v438_v30, %v445_v29  ;;  %v446_v41 = vsel %vm1582_vm8, %v444_v4, %v439_v35  ;;  %v447_v42 = vsel %vm1572_vm7, %v445_v29, %v438_v30 }
 0x3b2   : > { %v1148_v54 = vpop.permute.xlu0 %1147 }
 0x3b3   : > { %v1150_v55 = vunpack.i.h.bf16 %v1148_v54  ;;  %v1149_v56 = vunpack.i.l.bf16 %v1148_v54 }
 0x3b5   : > { %v1776_v59 = vsel %vm243_vm0, %v1149_v56, %v1150_v55  ;;  %v721_v60 = vsel %vm243_vm0, %v1150_v55, %v1149_v56 }
 0x3b6   : > { %v1783_v61 = vsel %vm229_vm2, %v1772_v58, %v721_v60  ;;  %v1796_v10 = vsel %vm226_vm1, %v1776_v59, %v727_v27 }
 0x3b7   : > { %v1191_v21 = vpack.i.bf16 %v1783_v61, %v1776_v59  ;;  %v1211_v63 = vpack.i.bf16 %v1772_v58, %v1796_v10 }
 0x3b9   : > { %1192 = vrot.lane.b32.xlu2 %v1191_v21, %s1335_s11  ;;  %1182 = vrot.lane.b32.xlu0 %v1191_v21, %s1336_s12 }
 0x3c1   : > { %1197 = vrot.lane.b32.xlu2 %v1151_v38, %s1336_s12  ;;  %1187 = vrot.lane.b32.xlu0 %v1176_v50, %s1335_s11 }
 0x3c9   : > { %1212 = vrot.lane.b32.xlu2 %v1211_v63, %s1335_s11  ;;  %1207 = vrot.lane.b32.xlu0 %v1211_v63, %s1336_s12  ;;  %s884_s11 = sshll.u32 %s218_s5, 4  ;;  %s885_s11 = int_to_ptr.vmem [resolvable:$true] %s884_s11 }
 0x401   : > { %v1173_v7 = vpop.permute.xlu0 %1172  ;;  %v1168_v8 = vpop.permute.xlu1 %1167 }
 0x402   : > { %v1175_v11 = vunpack.i.h.bf16 %v1173_v7  ;;  %v1174_v12 = vunpack.i.l.bf16 %v1173_v7  ;;  %v1170_v13 = vunpack.i.h.bf16 %v1168_v8  ;;  %v1169_v14 = vunpack.i.l.bf16 %v1168_v8 }
 0x404   : > { %v455_v1 = vsel %vm260_vm3, %v1170_v13, %v1169_v14  ;;  %v460_v16 = vsel %vm267_vm4, %v1174_v12, %v1175_v11  ;;  %v454_v17 = vsel %vm260_vm3, %v1169_v14, %v1170_v13  ;;  %v461_v18 = vsel %vm267_vm4, %v1175_v11, %v1174_v12 }
 0x405   : > { %v464_v19 = vsel %vm1560_vm6, %v455_v1, %v460_v16  ;;  %v465_v23 = vsel %vm1556_vm5, %v454_v17, %v461_v18  ;;  %v462_v32 = vsel %vm1582_vm8, %v460_v16, %v455_v1  ;;  %v463_v38 = vsel %vm1572_vm7, %v461_v18, %v454_v17 }
 0x406   : > { %480 = vmatpush.msra.mxu2 %v464_v19  ;;  %500 = vmatpush.msra.mxu3 %v465_v23 }
 0x408   : > { %481 = vmatpush.msra.mxu2 %v406_v25  ;;  %501 = vmatpush.msra.mxu3 %v417_v45  ;;  %v1340_v45 = vmov 3  }
 0x409   : > { %1216 = vset.pattern.permute.xlu1 %v1340_v45  ;;  %v1178_v47 = vpop.permute.xlu1 %1177 }
 0x40a   : > { %482 = vmatpush.msra.mxu2 %v462_v32  ;;  %502 = vmatpush.msra.mxu3 %v463_v38  ;;  %v1180_v22 = vunpack.i.h.bf16 %v1178_v47 }
 0x40b   : > { %467 = vperm.xlu1 %1216, %v1595_v6  }
 0x40c   : > { %483 = vmatpush.msra.mxu2 %v448_v39  ;;  %503 = vmatpush.msra.mxu3 %v449_v40 }
 0x40e   : > { %484 = vmatpush.msra.mxu2 %v400_v26  ;;  %504 = vmatpush.msra.mxu3 %v401_v28  ;;  %v1179_v26 = vunpack.i.l.bf16 %v1178_v47 }
 0x410   : > { %485 = vmatpush.msra.mxu2 %v446_v41  ;;  %505 = vmatpush.msra.mxu3 %v447_v42  ;;  %v423_v50 = vsel %vm260_vm3, %v1180_v22, %v1179_v26  ;;  %v422_v51 = vsel %vm260_vm3, %v1179_v26, %v1180_v22 }
 0x411   : > { %v1203_v8 = vpop.permute.xlu1 %1202 }
 0x412   : > { %v1205_v1 = vunpack.i.h.bf16 %v1203_v8  ;;  %v1204_v16 = vunpack.i.l.bf16 %v1203_v8 }
 0x413   : > { %v1193_v25 = vpop.permute.xlu2 %1192 }
 0x414   : > { %v1195_v27 = vunpack.i.h.bf16 %v1193_v25  ;;  %v1194_v63 = vunpack.i.l.bf16 %v1193_v25 }
 0x416   : > { %v775_v14 = vsel %vm267_vm4, %v1195_v27, %v1194_v63 }
 0x41b   : > { %v1198_v56 = vpop.permute.xlu2 %1197 }
 0x41c   : > { %v1199_v13 = vunpack.i.l.bf16 %v1198_v56 }
 0x423   : > { %v1213_v23 = vpop.permute.xlu2 %1212 }
 0x424   : > { %v1215_v4 = vunpack.i.h.bf16 %v1213_v23  ;;  %v1214_v29 = vunpack.i.l.bf16 %v1213_v23 }
 0x426   : > { %v742_v33 = vsel %vm267_vm4, %v1214_v29, %v1215_v4  ;;  %v743_v34 = vsel %vm267_vm4, %v1215_v4, %v1214_v29  ;;  %v1342_v29 = vmov 5  }
 0x427   : > { %1218 = vset.pattern.permute.xlu2 %v1342_v29 }
 0x42b   : > { %v1183_v43 = vpop.permute.xlu0 %1182 }
 0x42c   : > { %v1185_v52 = vunpack.i.h.bf16 %v1183_v43  ;;  %v1184_v53 = vunpack.i.l.bf16 %v1183_v43 }
 0x42e   : > { %v769_v5 = vsel %vm260_vm3, %v1185_v52, %v1184_v53  ;;  %v768_v7 = vsel %vm260_vm3, %v1184_v53, %v1185_v52  ;;  %v1341_v53 = vmov 4  }
 0x42f   : > { %v779_v0 = vsel %vm1556_vm5, %v768_v7, %v775_v14  ;;  %v777_v20 = vsel %vm1572_vm7, %v775_v14, %v768_v7  ;;  %1217 = vset.pattern.permute.xlu0 %v1341_v53  ;;  %1219 = vset.pattern.permute.xlu1 %v1341_v53 }
 0x433   : > { %v1188_v48 = vpop.permute.xlu0 %1187 }
 0x434   : > { %v1190_v24 = vunpack.i.h.bf16 %v1188_v48  ;;  %v1189_v28 = vunpack.i.l.bf16 %v1188_v48 }
 0x436   : > { %v428_v54 = vsel %vm267_vm4, %v1189_v28, %v1190_v24  ;;  %v429_v55 = vsel %vm267_vm4, %v1190_v24, %v1189_v28 }
 0x437   : > { %v432_v60 = vsel %vm1560_vm6, %v423_v50, %v428_v54  ;;  %v433_v21 = vsel %vm1556_vm5, %v422_v51, %v429_v55  ;;  %v430_v11 = vsel %vm1582_vm8, %v428_v54, %v423_v50  ;;  %v431_v12 = vsel %vm1572_vm7, %v429_v55, %v422_v51 }
 0x438   : > { %486 = vmatpush.msra.mxu2 %v432_v60  ;;  %506 = vmatpush.msra.mxu3 %v433_v21 }
 0x43a   : > { %487 = vmatpush.msra.mxu2 %v1764_v49  ;;  %507 = vmatpush.msra.mxu3 %v1751_v31  ;;  %v1200_v49 = vunpack.i.h.bf16 %v1198_v56  ;;  %v774_v31 = vsel %vm267_vm4, %v1194_v63, %v1195_v27 }
 0x43b   : > { %v778_v15 = vsel %vm1560_vm6, %v769_v5, %v774_v31  ;;  %v1208_v17 = vpop.permute.xlu0 %1207  ;;  %v776_v2 = vsel %vm1582_vm8, %v774_v31, %v769_v5 }
 0x43c   : > { %488 = vmatpush.msra.mxu2 %v430_v11  ;;  %508 = vmatpush.msra.mxu3 %v431_v12  ;;  %v753_v18 = vsel %vm260_vm3, %v1200_v49, %v1199_v13  ;;  %v752_v19 = vsel %vm260_vm3, %v1199_v13, %v1200_v49  ;;  %v1210_v35 = vunpack.i.h.bf16 %v1208_v17  ;;  %v1209_v30 = vunpack.i.l.bf16 %v1208_v17 }
 0x43d   : > { %972 = vmatmul.msk.f32.vlgmr.msra.gmra.mxu2 %vm311_vm9, %v235_v3  ;;  %973 = vmatmul.msk.f32.vlgmr.msra.gmra.mxu3 %vm311_vm9, %v235_v3 }
 0x43e   : > { %787 = vmatpush.msrb.mxu2 %v778_v15  ;;  %807 = vmatpush.msrb.mxu3 %v779_v0  ;;  %v737_v39 = vsel %vm260_vm3, %v1210_v35, %v1209_v30  ;;  %v736_v40 = vsel %vm260_vm3, %v1209_v30, %v1210_v35 }
 0x43f   : > { %v744_v43 = vsel %vm1582_vm8, %v742_v33, %v737_v39  ;;  %v745_v25 = vsel %vm1572_vm7, %v743_v34, %v736_v40 }
 0x440   : > { %788 = vmatpush.msrb.mxu2 %v1776_v59  ;;  %808 = vmatpush.msrb.mxu3 %v1783_v61  ;;  %v758_v59 = vsel %vm267_vm4, %v1204_v16, %v1205_v1  ;;  %v759_v61 = vsel %vm267_vm4, %v1205_v1, %v1204_v16 }
 0x441   : > { %v762_v32 = vsel %vm1560_vm6, %v753_v18, %v758_v59  ;;  %v763_v38 = vsel %vm1556_vm5, %v752_v19, %v759_v61  ;;  %v760_v41 = vsel %vm1582_vm8, %v758_v59, %v753_v18  ;;  %v761_v42 = vsel %vm1572_vm7, %v759_v61, %v752_v19 }
 0x442   : > { %789 = vmatpush.msrb.mxu2 %v776_v2  ;;  %809 = vmatpush.msrb.mxu3 %v777_v20 }
 0x444   : > { %790 = vmatpush.msrb.mxu2 %v762_v32  ;;  %810 = vmatpush.msrb.mxu3 %v763_v38 }
 0x446   : > { %791 = vmatpush.msrb.mxu2 %v714_v36  ;;  %811 = vmatpush.msrb.mxu3 %v715_v37  ;;  %v746_v36 = vsel %vm1560_vm6, %v737_v39, %v742_v33  ;;  %v747_v37 = vsel %vm1556_vm5, %v736_v40, %v743_v34 }
 0x448   : > { %792 = vmatpush.msrb.mxu2 %v760_v41  ;;  %812 = vmatpush.msrb.mxu3 %v761_v42 }
 0x44a   : > { %793 = vmatpush.msrb.mxu2 %v746_v36  ;;  %813 = vmatpush.msrb.mxu3 %v747_v37 }
 0x44c   : > { %794 = vmatpush.msrb.mxu2 %v1796_v10  ;;  %814 = vmatpush.msrb.mxu3 %v1772_v58 }
 0x44e   : > { %795 = vmatpush.msrb.mxu2 %v744_v43  ;;  %815 = vmatpush.msrb.mxu3 %v745_v25 }
 0x44f   : > { %978 = vmatmul.msk.f32.vlgmr.msrb.gmra.mxu2 %vm311_vm9, %v235_v3  ;;  %979 = vmatmul.msk.f32.vlgmr.msrb.gmra.mxu3 %vm311_vm9, %v235_v3 }
 0x47d   : > { %v468_v9 = vpop.permute.xlu1 %467 }
 0x4c0   : > { %v490_v44 = vpop.f32.mrf.mxu2  ;;  %v510_v46 = vpop.f32.mrf.mxu3 }
 0x4c1   : > { %v1920_v45 = vadd.f32 %v490_v44, %v468_v9  ;;  %v1922_v10 = vadd.f32 %v510_v46, %v468_v9  ;;  %v1230_v46 = vld [vmem:[%s1461_s14 + $0x8] sm:$0xff] }
 0x4c3   : > { %v513_v62 = vadd.f32 %v1922_v10, %v1920_v45  ;;  %v517_v57 = vmul.f32 %v1920_v45, %v1920_v45  ;;  %v518_v58 = vmul.f32 %v1922_v10, %v1922_v10 }
 0x4c5   : > { %514 = vadd.xlane.f32.xlu0 %v513_v62  ;;  %v519_v47 = vadd.f32 %v518_v58, %v517_v57 }
 0x4c7   : > { %520 = vadd.xlane.f32.xlu1 %v519_v47 }
 0x4d2   : > { %v797_v22 = vpop.f32.mrf.mxu2  ;;  %v817_v26 = vpop.f32.mrf.mxu3 }
 0x4d3   : > { %v1930_v48 = vadd.f32 %v797_v22, %v468_v9  ;;  %v1932_v24 = vadd.f32 %v817_v26, %v468_v9  ;;  %v1229_v9 = vld [vmem:[%s1461_s14] sm:$0xff]  ;;  %v1231_v22 = vld [vmem:[%s1461_s14 + $0x10] sm:$0xff] }
 0x4d5   : > { %v820_v28 = vadd.f32 %v1932_v24, %v1930_v48  ;;  %v824_v50 = vmul.f32 %v1930_v48, %v1930_v48  ;;  %v825_v51 = vmul.f32 %v1932_v24, %v1932_v24 }
 0x4d7   : > { %821 = vadd.xlane.f32.xlu2 %v820_v28  ;;  %v826_v52 = vadd.f32 %v825_v51, %v824_v50  ;;  %v1232_v28 = vld [vmem:[%s1461_s14 + $0x18] sm:$0xff] }
 0x4d9   : > { %827 = vadd.xlane.f32.xlu0 %v826_v52 }
 0x538   : > { %v515_v54 = vpop.xlane.xlu0 %514 }
 0x539   : > { %v516_v55 = vmul.f32 0.00390625, %v515_v54 }
 0x53a   : > { %v521_v56 = vpop.xlane.xlu1 %520 }
 0x53b   : > { %v523_v60 = vmul.f32 %v516_v55, %v516_v55  ;;  %v522_v21 = vmul.f32 0.00390625, %v521_v56 }
 0x53d   : > { %v524_v27 = vsub.f32 %v522_v21, %v523_v60 }
 0x53f   : > { %v525_v63 = vmax.f32 %v524_v27, 0.0 }
 0x541   : > { %v526_v3 = vadd.f32 1e-05, %v525_v63 }
 0x543   : > { %1225 = vrsqrt.f32 %v526_v3  ;;  %vm533_vm0 = vweird.f32 %v526_v3 }
 0x549   : > { %v1226_v5 = vpop.eup %1225 }
 0x54a   : > { %v528_v7 = vmul.f32 %v1226_v5, %v526_v3  ;;  %v822_v8 = vpop.xlane.xlu2 %821  ;;  %vm534_vm1 = vweird.f32 %v1226_v5 }
 0x54b   : > { %v823_v11 = vmul.f32 0.00390625, %v822_v8  ;;  %vm535_vm2 = vmor %vm533_vm0, %vm534_vm1 }
 0x54c   : > { %v529_v12 = vmul.f32 %v1226_v5, %v528_v7  ;;  %v828_v49 = vpop.xlane.xlu0 %827 }
 0x54d   : > { %v830_v13 = vmul.f32 %v823_v11, %v823_v11  ;;  %v829_v31 = vmul.f32 0.00390625, %v828_v49 }
 0x54e   : > { %v530_v14 = vmul.f32 0.5, %v529_v12 }
 0x54f   : > { %v831_v15 = vsub.f32 %v829_v31, %v830_v13 }
 0x550   : > { %v531_v0 = vsub.f32 1.5, %v530_v14 }
 0x551   : > { %v832_v1 = vmax.f32 %v831_v15, 0.0 }
 0x552   : > { %v532_v16 = vmul.f32 %v1226_v5, %v531_v0 }
 0x553   : > { %v833_v17 = vadd.f32 1e-05, %v832_v1 }
 0x554   : > { %v536_v18 = vsel %vm535_vm2, %v1226_v5, %v532_v16 }
 0x555   : > { %1227 = vrsqrt.f32 %v833_v17  ;;  %v537_v19 = vmul.f32 %v536_v18, %v1595_v6  ;;  %vm840_vm4 = vweird.f32 %v833_v17 }
 0x557   : > { %546 = vperm.xlu0 %1217, %v537_v19   ;;  %v538_v23 = vmul.f32 %v537_v19, %v516_v55 }
 0x559   : > { %540 = vrot.lane.b32.xlu2 %v538_v23, %s1336_s12 }
 0x55b   : > { %v1228_v2 = vpop.eup %1227 }
 0x55c   : > { %v835_v20 = vmul.f32 %v1228_v2, %v833_v17  ;;  %vm841_vm3 = vweird.f32 %v1228_v2 }
 0x55d   : > { %vm842_vm5 = vmor %vm840_vm4, %vm841_vm3 }
 0x55e   : > { %v836_v35 = vmul.f32 %v1228_v2, %v835_v20 }
 0x55f   : > { %1220 = vset.pattern.permute.xlu0 %v1342_v29 }
 0x560   : > { %v837_v30 = vmul.f32 0.5, %v836_v35 }
 0x562   : > { %v838_v59 = vsub.f32 1.5, %v837_v30 }
 0x564   : > { %v839_v61 = vmul.f32 %v1228_v2, %v838_v59 }
 0x566   : > { %v843_v32 = vsel %vm842_vm5, %v1228_v2, %v839_v61 }
 0x567   : > { %v844_v38 = vmul.f32 %v843_v32, %v1595_v6 }
 0x569   : > { %v845_v4 = vmul.f32 %v844_v38, %v823_v11 }
 0x56b   : > { %847 = vrot.lane.b32.xlu1 %v845_v4, %s1336_s12  ;;  %s1277_s12 = sshra.s32 %s887_s8, 4  ;;  %s1278_s12 = int_to_ptr.hbm [resolvable:$true] %s1277_s12 }
 0x56c   : > { %s1279_s13 = scalar_lea.hbm %s1278_s12, 32  ;;  %p1284_p0 = scmp.lt.s32.totalorder %s1278_s12, %s1994_s4 }
 0x56d   : > { %p1280_p6 = scmp.ne.s32.totalorder %s1278_s12, %s1279_s13  ;;  %p1285_p1 = scmp.lt.s32.totalorder %s1283_s23, %s1279_s13 }
 0x56f   : > { %p1281_p9 = pnand %p1280_p6, %p1419_p11  ;;  %p1286_p3 = por %p1285_p1, %p1284_p0 }
 0x571   : > { %p1282_p13 = pneg %p1281_p9 }
 0x573   : > { %853 = vperm.xlu1 %1219, %v844_v38   ;;  %p1287_p4 = pnand %p1286_p3, %p1282_p13 }
 0x5b3   : > { %v541_v39 = vpop.permute.xlu2 %540 }
 0x5b4   : > { %v543_v40 = vsub.f32 %v1595_v6, %v541_v39 }
 0x5b6   : > { %553 = vperm.xlu2 %1218, %v543_v40  }
 0x5c9   : > { %v547_v33 = vpop.permute.xlu0 %546 }
 0x5ca   : > { %v549_v34 = vmul.f32 %v547_v33, %v1920_v45  ;;  %v550_v36 = vmul.f32 %v547_v33, %v1922_v10 }
 0x5dd   : > { %v848_v41 = vpop.permute.xlu1 %847 }
 0x5de   : > { %v850_v42 = vsub.f32 %v1595_v6, %v848_v41 }
 0x5e0   : > { %860 = vperm.xlu2 %1218, %v850_v42  }
 0x5e5   : > { %v854_v6 = vpop.permute.xlu1 %853 }
 0x5e6   : > { %v856_v45 = vmul.f32 %v854_v6, %v1930_v48  ;;  %v857_v10 = vmul.f32 %v854_v6, %v1932_v24 }
 0x610   : > { %v554_v37 = vpop.permute.xlu2 %553 }
 0x611   : > { %v556_v43 = vadd.f32 %v554_v37, %v549_v34  ;;  %v557_v25 = vadd.f32 %v554_v37, %v550_v36 }
 0x613   : > { %v558_v44 = vadd.f32 %v1229_v9, %v556_v43  ;;  %v559_v62 = vadd.f32 %v1230_v46, %v557_v25 }
 0x615   : > { %560 = vst [vmem:[%s218_s5] sm:$0xff] %v558_v44 }
 0x616   : > { %561 = vst [vmem:[%s218_s5 + $0x8] sm:$0xff] %v559_v62 }
 0x63a   : > { %v861_v57 = vpop.permute.xlu2 %860 }
 0x63b   : > { %v863_v58 = vadd.f32 %v861_v57, %v856_v45  ;;  %v864_v47 = vadd.f32 %v861_v57, %v857_v10 }
 0x63d   : > { %v865_v26 = vadd.f32 %v1231_v22, %v863_v58  ;;  %v866_v50 = vadd.f32 %v1232_v28, %v864_v47 }
 0x63f   : > { %980 = vst [vmem:[%s218_s5 + $0x10] sm:$0xff] %v865_v26 }
 0x640   : > { %981 = vst [vmem:[%s218_s5 + $0x18] sm:$0xff] %v866_v50 }
 0x641   : > { %1290 = shalt.err (!%p1287_p4)
}
 0x642   : > { %s1343_s7 = smov 256  }
 0x643   : > { %994 = dma.vmem_to_hbm [thread:$0]  (%p1419_p11), %s885_s11, 512, %s887_s8, %s871_s19, %s1343_s7, %s1343_s7, %s1334_s9  }
 0x644 PF: > { %s901_s14 = sand.u32 1, %s1317_s15   ;;  %p2008_p7 = scmp.ge.s32.totalorder %s1329_s18, 2 }
 0x645   : > { %s902_s5 = scalar_lea.sflag [#allocation4], %s901_s14 }
 0x646   : > { %p1001_p5 = pnand %p2008_p7, %p1423_p12 }
 0x648   : > { %p1002_p8 = pneg %p1001_p5 }
 0x64a   : > { %1312 = dma.done.wait (%p1002_p8), %s902_s5, 512  }
 0x64b   : > { %1314 = vsyncadd (%p1002_p8), %s902_s5, 4294966784  ;;  %p17_p10 = scmp.ge.s32.totalorder %s1394_s21, 4   ;;  %s2009_s15 = smov %s1321_s16 }
 0x64c   : > { %s2010_s16 = smov %s1325_s17  ;;  %s2011_s17 = smov %s1406_s24 }
 0x64d   : > { %s2012_s18 = smov %s1394_s21  ;;  %19 = sbr.rel (!%p17_p10) target bundleno = 5 (0x5), region = 83 }
 0x652   :  { %908 = vsyncpa [#allocation3], 1 }
 0x653   :  { %910 = vsyncpa [#allocation3 + $0x1], 1 }
 0x654   :  { %911 = vsyncpa [#allocation4], 1 }
 0x655   :  { %913 = vsyncpa [#allocation4 + $0x1], 1 }

</bundles_post_ra>
